<compile_context>
chip_gen: v6e
topology: v6e:2x2x1
jax: 0.10.0
libtpu: 0.0.40
codegen_flags: <defaults>
</compile_context>

<pallas_src>
import functools

import jax
import jax.numpy as jnp
from jax import lax
from jax.experimental import pallas as pl
from jax.experimental.pallas import tpu as pltpu

SELU_ALPHA = 1.6732632423543772848170429916717
SELU_SCALE = 1.0507009873554804934193349852946
EPS = 1e-5  # PyTorch InstanceNorm2d default eps


def _selu(z):
    return SELU_SCALE * jnp.where(z > 0, z, SELU_ALPHA * (jnp.exp(z) - 1.0))


def _cov_kernel(H, W, cin_band, x_ref, w_ref, g_ref, b_ref, o_ref, pat_ref):
    """One grid step = block_b samples.

    x_ref   : (bt, cin_band, H*W)        input (f32 or bf16), lane-dense
    w_ref   : (Cout, 3*K_pad)    bf16    K-packed weight [w_hi | w_lo | w_hi]
    g_ref   : (Cout, 1)          f32     InstanceNorm gamma
    b_ref   : (Cout, 1)          f32     InstanceNorm beta
    o_ref   : (bt, Cout, H*W)            output (same dtype as input)
    pat_ref : (3*K_pad, bt*H*W)  bf16    K-packed im2col patch [p_hi; p_hi; p_lo]
    """
    bt, _, hw = x_ref.shape
    kpad = 9 * cin_band

    # Lane-index masks for the reflection-padding boundary fix-ups
    # (hoisted once: shared by every tap and every sample).
    lane = lax.broadcasted_iota(jnp.int32, (cin_band, hw), 1)
    h_first = lane < W
    h_last = lane >= (H - 1) * W
    w_idx = lane % W
    w_first = w_idx == 0
    w_last = w_idx == W - 1

    def row_tap(xf, dy):
        # value of the reflect-padded input at row (h + dy), same column.
        if dy == 0:
            return xf
        down = pltpu.roll(xf, W, axis=1)        # [i] = x[i - W]  (row h-1)
        up = pltpu.roll(xf, hw - W, axis=1)     # [i] = x[i + W]  (row h+1)
        if dy < 0:
            return jnp.where(h_first, up, down)      # reflect row -1 -> row 1
        return jnp.where(h_last, down, up)           # reflect row H  -> row H-2

    def col_tap(rf, dx):
        if dx == 0:
            return rf
        right = pltpu.roll(rf, 1, axis=1)       # [i] = r[i - 1]  (col w-1)
        left = pltpu.roll(rf, hw - 1, axis=1)   # [i] = r[i + 1]  (col w+1)
        if dx < 0:
            return jnp.where(w_first, left, right)   # reflect col -1 -> col 1
        return jnp.where(w_last, right, left)        # reflect col W  -> col W-2

    # ---- im2col, built directly in bf16 (hi + residual lo), tap-banded. ----
    # Every store is a full, 8-sublane-aligned (cin_band, H*W) slab; all rows
    # of the scratch are overwritten every grid step.
    # NOTE: per-sample loops stay statically unrolled because block_b is small
    # here; switch them to lax.fori_loop if block_b is raised to 8+ (keeps
    # code size / vreg pressure flat, per perf review).
    for s in range(bt):
        xf = x_ref[s].astype(jnp.float32)       # (cin_band, H*W)
        c0, c1 = s * hw, (s + 1) * hw
        t = 0
        for dy in (-1, 0, 1):
            rf = row_tap(xf, dy)
            for dx in (-1, 0, 1):
                tap = col_tap(rf, dx)                          # f32
                hi = tap.astype(jnp.bfloat16)
                lo = (tap - hi.astype(jnp.float32)).astype(jnp.bfloat16)
                r0 = t * cin_band
                pat_ref[r0:r0 + cin_band, c0:c1] = hi                          # vs w_hi
                pat_ref[kpad + r0:kpad + r0 + cin_band, c0:c1] = hi            # vs w_lo
                pat_ref[2 * kpad + r0:2 * kpad + r0 + cin_band, c0:c1] = lo    # vs w_hi
                t += 1

    # ---- conv: ONE K-packed MXU contraction (3 bf16 passes folded in K). ---
    y = jnp.dot(w_ref[...], pat_ref[...], preferred_element_type=jnp.float32)
    # y: (Cout, bt*H*W), f32, lane-dense.

    gamma = g_ref[...]                           # (Cout, 1)
    beta = b_ref[...]
    inv_n = 1.0 / hw
    for s in range(bt):
        ys = y[:, s * hw:(s + 1) * hw]           # (Cout, H*W)
        s1 = jnp.sum(ys, axis=1, keepdims=True)          # one-pass stats
        s2 = jnp.sum(ys * ys, axis=1, keepdims=True)
        mu = s1 * inv_n
        var = jnp.maximum(s2 * inv_n - mu * mu, 0.0)     # clamp cancellation
        z = (ys - mu) * lax.rsqrt(var + EPS) * gamma + beta
        o_ref[s] = _selu(z).astype(o_ref.dtype)  # lane-dense (Cout, H*W) store


def _pick_block_b(B):
    """v5e/v6e: single TensorCore -> the grid is a serial loop, use one grid
    step (block_b = B).  v7x: two TensorCores -> keep >= 2 grid steps on the
    "parallel" batch axis.  Always returns a divisor of B."""
    try:
        kind = jax.devices()[0].device_kind.lower()
    except Exception:
        kind = ""
    two_tc = ("v7" in kind) or ("7x" in kind)
    if not two_tc or B < 2:
        return B
    for d in range(B // 2, 0, -1):      # largest divisor of B giving grid >= 2
        if B % d == 0:
            return d
    return B


def cov_forward(x, w_oihw, gamma, beta, *, block_b=None):
    """Cov.forward: ReflectionPad2d(1) + Conv2d(3x3, stride=1, bias=False)
    + InstanceNorm2d(affine=True) + SELU.  x is NCHW; output is NCHW with the
    same dtype as x (feed bf16 activations for ~2x on the HBM roofline)."""
    B, Cin, H, W = x.shape
    Cout, Cin_w, KH, KW = w_oihw.shape
    assert (Cin_w, KH, KW) == (Cin, 3, 3)
    # TODO(synk): only the module defaults (kernel_size=3, stride=1) are implemented.
    assert H >= 2 and W >= 2, "reflection pad of 1 needs H, W >= 2"

    if block_b is None:
        block_b = _pick_block_b(B)
    assert B % block_b == 0, "block_b must divide B"

    HW = H * W
    cin_band = max(8, -(-Cin // 8) * 8)          # pad channels to a multiple of 8
    kpad = 9 * cin_band

    # Weight: OIHW (Cout, Cin, 3, 3) -> (Cout, 9, cin_band) with the per-tap
    # channel band zero-padded (matches the in-kernel patch-row layout), then
    # split to bf16 hi/lo and K-packed [w_hi | w_lo | w_hi] so all three bf16
    # passes run as ONE matmul.
    w_t = jnp.transpose(w_oihw.astype(jnp.float32), (0, 2, 3, 1)).reshape(Cout, 9, Cin)
    if cin_band != Cin:
        w_t = jnp.pad(w_t, ((0, 0), (0, 0), (0, cin_band - Cin)))
    w2d = w_t.reshape(Cout, kpad)
    w_hi = w2d.astype(jnp.bfloat16)
    w_lo = (w2d - w_hi.astype(jnp.float32)).astype(jnp.bfloat16)
    w_packed = jnp.concatenate([w_hi, w_lo, w_hi], axis=1)       # (Cout, 3*kpad)

    g = gamma.reshape(Cout, 1).astype(jnp.float32)
    b = beta.reshape(Cout, 1).astype(jnp.float32)

    # NCHW kept end-to-end: free reshape + tiny channel zero-pad, no transposes.
    x_flat = x.reshape(B, Cin, HW)
    if cin_band != Cin:
        x_flat = jnp.pad(x_flat, ((0, 0), (0, cin_band - Cin), (0, 0)))

    # VMEM budget (patch + double-buffered in/out blocks + weights); raise the
    # scoped limit only if a large block_b / Cin would exceed the default
    # (matters on v7x, whose VMEM is half of v5e/v6e).
    itemsize = x.dtype.itemsize
    est = (3 * kpad * block_b * HW * 2                 # bf16 patch scratch
           + 2 * block_b * cin_band * HW * itemsize    # double-buffered input
           + 2 * block_b * Cout * HW * itemsize        # double-buffered output
           + 2 * Cout * 3 * kpad * 2)                  # weights
    vmem_limit = None if est < (24 << 20) else min(2 * est, 64 << 20)

    kernel = functools.partial(_cov_kernel, H, W, cin_band)
    out = pl.pallas_call(
        kernel,
        out_shape=jax.ShapeDtypeStruct((B, Cout, HW), x.dtype),
        grid_spec=pltpu.PrefetchScalarGridSpec(
            num_scalar_prefetch=0,
            grid=(B // block_b,),
            in_specs=[
                pl.BlockSpec((block_b, cin_band, HW), lambda i: (i, 0, 0)),
                pl.BlockSpec((Cout, 3 * kpad), lambda i: (0, 0)),
                pl.BlockSpec((Cout, 1), lambda i: (0, 0)),
                pl.BlockSpec((Cout, 1), lambda i: (0, 0)),
            ],
            out_specs=pl.BlockSpec((block_b, Cout, HW), lambda i: (i, 0, 0)),
            scratch_shapes=[pltpu.VMEM((3 * kpad, block_b * HW), jnp.bfloat16)],
        ),
        compiler_params=pltpu.CompilerParams(
            dimension_semantics=("parallel",),
            vmem_limit_bytes=vmem_limit),
    )(x_flat, w_packed, g, b)
    return out.reshape(B, Cout, H, W)


def reference(x, w_oihw, gamma, beta):
    """Plain-JAX reference of Cov.forward (PyTorch semantics)."""
    xp = jnp.pad(x, ((0, 0), (0, 0), (1, 1), (1, 1)), mode="reflect")
    y = lax.conv_general_dilated(
        xp, w_oihw, window_strides=(1, 1), padding="VALID",
        dimension_numbers=("NCHW", "OIHW", "NCHW"),
        precision=lax.Precision.HIGHEST)
    mu = jnp.mean(y, axis=(2, 3), keepdims=True)
    var = jnp.mean((y - mu) ** 2, axis=(2, 3), keepdims=True)
    z = (y - mu) * lax.rsqrt(var + EPS) * gamma.reshape(1, -1, 1, 1) + beta.reshape(1, -1, 1, 1)
    return _selu(z)


if __name__ == "__main__":
    B, Cin, Cout, H, W = 2, 4, 8, 16, 16

    key = jax.random.PRNGKey(0)
    k1, k2, k3, k4 = jax.random.split(key, 4)
    x = jax.random.normal(k1, (B, Cin, H, W), jnp.float32)
    w = 0.1 * jax.random.normal(k2, (Cout, Cin, 3, 3), jnp.float32)   # Conv2d weight (OIHW), bias=False
    gamma = 1.0 + 0.1 * jax.random.normal(k3, (Cout,), jnp.float32)   # InstanceNorm2d.weight
    beta = 0.1 * jax.random.normal(k4, (Cout,), jnp.float32)          # InstanceNorm2d.bias

    ref = jax.block_until_ready(reference(x, w, gamma, beta))

    # f32 HBM-I/O path: full (hi/lo-split) precision.
    out = jax.block_until_ready(cov_forward(x, w, gamma, beta))
    assert out.shape == (B, Cout, H, W), out.shape
    max_err = float(jnp.max(jnp.abs(out - ref)))
    assert max_err < 1e-3, f"f32-path mismatch vs reference, max_err={max_err}"

    # bf16 HBM-I/O path (perf feedback: halve input/output HBM bytes); the
    # InstanceNorm/SELU math is still f32 in-kernel, tolerance is bf16-level.
    out_bf16 = jax.block_until_ready(cov_forward(x.astype(jnp.bfloat16), w, gamma, beta))
    assert out_bf16.dtype == jnp.bfloat16
    err_bf16 = float(jnp.max(jnp.abs(out_bf16.astype(jnp.float32) - ref)))
    assert err_bf16 < 7.5e-2, f"bf16-path mismatch vs reference, max_err={err_bf16}"

    print("KERNEL_OK")
</pallas_src>

<mosaic_0001>
module attributes {stable_mosaic.version = 11 : i64} {
  func.func @_cov_kernel(%arg0: i32, %arg1: memref<2x8x256xf32, #tpu.memory_space<vmem>>, %arg2: memref<8x216xbf16, #tpu.memory_space<vmem>>, %arg3: memref<8x1xf32, #tpu.memory_space<vmem>>, %arg4: memref<8x1xf32, #tpu.memory_space<vmem>>, %arg5: memref<2x8x256xf32, #tpu.memory_space<vmem>>, %arg6: memref<216x512xbf16, #tpu.memory_space<vmem>>) attributes {dimension_semantics = [#tpu.dimension_semantics<parallel>], iteration_bounds = array<i64: 1>, scalar_prefetch = 0 : i64, scratch_operands = 1 : i64, tpu.core_type = #tpu.core_type<tc>, window_params = [{transform_indices = @transform_0, window_bounds = array<i64: 2, 8, 256>}, {pipeline_mode = #tpu.pipeline_mode<synchronous>, transform_indices = @transform_1, window_bounds = array<i64: 8, 216>}, {pipeline_mode = #tpu.pipeline_mode<synchronous>, transform_indices = @transform_2, window_bounds = array<i64: 8, 1>}, {pipeline_mode = #tpu.pipeline_mode<synchronous>, transform_indices = @transform_3, window_bounds = array<i64: 8, 1>}, {transform_indices = @transform_4, window_bounds = array<i64: 2, 8, 256>}]} {
    %0 = tpu.iota {dimensions = array<i32: 1>} : vector<8x256xi32>
    %c16_i32 = arith.constant 16 : i32
    %1 = vector.broadcast %c16_i32 : i32 to vector<8x256xi32>
    %2 = arith.cmpi slt, %0, %1 : vector<8x256xi32>
    %c240_i32 = arith.constant 240 : i32
    %3 = vector.broadcast %c240_i32 : i32 to vector<8x256xi32>
    %4 = arith.cmpi sge, %0, %3 : vector<8x256xi32>
    %c16_i32_0 = arith.constant 16 : i32
    %c0_i32 = arith.constant 0 : i32
    %5 = arith.cmpi eq, %c16_i32_0, %c0_i32 : i32
    %c1_i32 = arith.constant 1 : i32
    %6 = arith.select %5, %c1_i32, %c16_i32_0 : i32
    %7 = vector.broadcast %6 : i32 to vector<8x256xi32>
    %8 = arith.remsi %0, %7 : vector<8x256xi32>
    %c0_i32_1 = arith.constant 0 : i32
    %9 = vector.broadcast %c0_i32_1 : i32 to vector<8x256xi32>
    %10 = arith.cmpi ne, %8, %9 : vector<8x256xi32>
    %c0_i32_2 = arith.constant 0 : i32
    %11 = vector.broadcast %c0_i32_2 : i32 to vector<8x256xi32>
    %12 = arith.cmpi slt, %8, %11 : vector<8x256xi32>
    %c0_i32_3 = arith.constant 0 : i32
    %13 = arith.cmpi slt, %6, %c0_i32_3 : i32
    %14 = vector.broadcast %13 : i1 to vector<8x256xi1>
    %15 = vector.broadcast %14 : vector<8x256xi1> to vector<8x256xi1>
    %16 = arith.xori %12, %15 : vector<8x256xi1>
    %17 = arith.andi %16, %10 : vector<8x256xi1>
    %18 = vector.broadcast %6 : i32 to vector<8x256xi32>
    %19 = arith.addi %8, %18 : vector<8x256xi32>
    %20 = arith.select %17, %19, %8 : vector<8x256xi1>, vector<8x256xi32>
    %c0_i32_4 = arith.constant 0 : i32
    %21 = vector.broadcast %c0_i32_4 : i32 to vector<8x256xi32>
    %22 = arith.cmpi eq, %20, %21 : vector<8x256xi32>
    %c15_i32 = arith.constant 15 : i32
    %23 = vector.broadcast %c15_i32 : i32 to vector<8x256xi32>
    %24 = arith.cmpi eq, %20, %23 : vector<8x256xi32>
    %c0 = arith.constant 0 : index
    %c0_5 = arith.constant 0 : index
    %c0_6 = arith.constant 0 : index
    %25 = vector.load %arg1[%c0, %c0_5, %c0_6] : memref<2x8x256xf32, #tpu.memory_space<vmem>>, vector<1x8x256xf32>
    %26 = vector.shape_cast %25 : vector<1x8x256xf32> to vector<8x256xf32>
    %c16_i32_7 = arith.constant 16 : i32
    %27 = tpu.dynamic_rotate %26 by %c16_i32_7 dim 1 : vector<8x256xf32>, i32 -> vector<8x256xf32>
    %c240_i32_8 = arith.constant 240 : i32
    %28 = tpu.dynamic_rotate %26 by %c240_i32_8 dim 1 : vector<8x256xf32>, i32 -> vector<8x256xf32>
    %29 = arith.select %2, %28, %27 : vector<8x256xi1>, vector<8x256xf32>
    %c1_i32_9 = arith.constant 1 : i32
    %30 = tpu.dynamic_rotate %29 by %c1_i32_9 dim 1 : vector<8x256xf32>, i32 -> vector<8x256xf32>
    %c255_i32 = arith.constant 255 : i32
    %31 = tpu.dynamic_rotate %29 by %c255_i32 dim 1 : vector<8x256xf32>, i32 -> vector<8x256xf32>
    %32 = arith.select %22, %31, %30 : vector<8x256xi1>, vector<8x256xf32>
    %33 = arith.truncf %32 : vector<8x256xf32> to vector<8x256xbf16>
    %34 = arith.extf %33 : vector<8x256xbf16> to vector<8x256xf32>
    %35 = arith.subf %32, %34 : vector<8x256xf32>
    %36 = arith.truncf %35 : vector<8x256xf32> to vector<8x256xbf16>
    %c0_10 = arith.constant 0 : index
    %c0_11 = arith.constant 0 : index
    %37 = vector.load %arg6[%c0_10, %c0_11] : memref<216x512xbf16, #tpu.memory_space<vmem>>, vector<8x256xbf16>
    tpu.vector_store %arg6[%c0_10, %c0_11], %33 {strides = array<i32>} : memref<216x512xbf16, #tpu.memory_space<vmem>>, vector<8x256xbf16>,
    %c72 = arith.constant 72 : index
    %c0_12 = arith.constant 0 : index
    %38 = vector.load %arg6[%c72, %c0_12] : memref<216x512xbf16, #tpu.memory_space<vmem>>, vector<8x256xbf16>
    tpu.vector_store %arg6[%c72, %c0_12], %33 {strides = array<i32>} : memref<216x512xbf16, #tpu.memory_space<vmem>>, vector<8x256xbf16>,
    %c144 = arith.constant 144 : index
    %c0_13 = arith.constant 0 : index
    %39 = vector.load %arg6[%c144, %c0_13] : memref<216x512xbf16, #tpu.memory_space<vmem>>, vector<8x256xbf16>
    tpu.vector_store %arg6[%c144, %c0_13], %36 {strides = array<i32>} : memref<216x512xbf16, #tpu.memory_space<vmem>>, vector<8x256xbf16>,
    %40 = arith.truncf %29 : vector<8x256xf32> to vector<8x256xbf16>
    %41 = arith.extf %40 : vector<8x256xbf16> to vector<8x256xf32>
    %42 = arith.subf %29, %41 : vector<8x256xf32>
    %43 = arith.truncf %42 : vector<8x256xf32> to vector<8x256xbf16>
    %c8 = arith.constant 8 : index
    %c0_14 = arith.constant 0 : index
    %44 = vector.load %arg6[%c8, %c0_14] : memref<216x512xbf16, #tpu.memory_space<vmem>>, vector<8x256xbf16>
    tpu.vector_store %arg6[%c8, %c0_14], %40 {strides = array<i32>} : memref<216x512xbf16, #tpu.memory_space<vmem>>, vector<8x256xbf16>,
    %c80 = arith.constant 80 : index
    %c0_15 = arith.constant 0 : index
    %45 = vector.load %arg6[%c80, %c0_15] : memref<216x512xbf16, #tpu.memory_space<vmem>>, vector<8x256xbf16>
    tpu.vector_store %arg6[%c80, %c0_15], %40 {strides = array<i32>} : memref<216x512xbf16, #tpu.memory_space<vmem>>, vector<8x256xbf16>,
    %c152 = arith.constant 152 : index
    %c0_16 = arith.constant 0 : index
    %46 = vector.load %arg6[%c152, %c0_16] : memref<216x512xbf16, #tpu.memory_space<vmem>>, vector<8x256xbf16>
    tpu.vector_store %arg6[%c152, %c0_16], %43 {strides = array<i32>} : memref<216x512xbf16, #tpu.memory_space<vmem>>, vector<8x256xbf16>,
    %c1_i32_17 = arith.constant 1 : i32
    %47 = tpu.dynamic_rotate %29 by %c1_i32_17 dim 1 : vector<8x256xf32>, i32 -> vector<8x256xf32>
    %c255_i32_18 = arith.constant 255 : i32
    %48 = tpu.dynamic_rotate %29 by %c255_i32_18 dim 1 : vector<8x256xf32>, i32 -> vector<8x256xf32>
    %49 = arith.select %24, %47, %48 : vector<8x256xi1>, vector<8x256xf32>
    %50 = arith.truncf %49 : vector<8x256xf32> to vector<8x256xbf16>
    %51 = arith.extf %50 : vector<8x256xbf16> to vector<8x256xf32>
    %52 = arith.subf %49, %51 : vector<8x256xf32>
    %53 = arith.truncf %52 : vector<8x256xf32> to vector<8x256xbf16>
    %c16 = arith.constant 16 : index
    %c0_19 = arith.constant 0 : index
    %54 = vector.load %arg6[%c16, %c0_19] : memref<216x512xbf16, #tpu.memory_space<vmem>>, vector<8x256xbf16>
    tpu.vector_store %arg6[%c16, %c0_19], %50 {strides = array<i32>} : memref<216x512xbf16, #tpu.memory_space<vmem>>, vector<8x256xbf16>,
    %c88 = arith.constant 88 : index
    %c0_20 = arith.constant 0 : index
    %55 = vector.load %arg6[%c88, %c0_20] : memref<216x512xbf16, #tpu.memory_space<vmem>>, vector<8x256xbf16>
    tpu.vector_store %arg6[%c88, %c0_20], %50 {strides = array<i32>} : memref<216x512xbf16, #tpu.memory_space<vmem>>, vector<8x256xbf16>,
    %c160 = arith.constant 160 : index
    %c0_21 = arith.constant 0 : index
    %56 = vector.load %arg6[%c160, %c0_21] : memref<216x512xbf16, #tpu.memory_space<vmem>>, vector<8x256xbf16>
    tpu.vector_store %arg6[%c160, %c0_21], %53 {strides = array<i32>} : memref<216x512xbf16, #tpu.memory_space<vmem>>, vector<8x256xbf16>,
    %c1_i32_22 = arith.constant 1 : i32
    %57 = tpu.dynamic_rotate %26 by %c1_i32_22 dim 1 : vector<8x256xf32>, i32 -> vector<8x256xf32>
    %c255_i32_23 = arith.constant 255 : i32
    %58 = tpu.dynamic_rotate %26 by %c255_i32_23 dim 1 : vector<8x256xf32>, i32 -> vector<8x256xf32>
    %59 = arith.select %22, %58, %57 : vector<8x256xi1>, vector<8x256xf32>
    %60 = arith.truncf %59 : vector<8x256xf32> to vector<8x256xbf16>
    %61 = arith.extf %60 : vector<8x256xbf16> to vector<8x256xf32>
    %62 = arith.subf %59, %61 : vector<8x256xf32>
    %63 = arith.truncf %62 : vector<8x256xf32> to vector<8x256xbf16>
    %c24 = arith.constant 24 : index
    %c0_24 = arith.constant 0 : index
    %64 = vector.load %arg6[%c24, %c0_24] : memref<216x512xbf16, #tpu.memory_space<vmem>>, vector<8x256xbf16>
    tpu.vector_store %arg6[%c24, %c0_24], %60 {strides = array<i32>} : memref<216x512xbf16, #tpu.memory_space<vmem>>, vector<8x256xbf16>,
    %c96 = arith.constant 96 : index
    %c0_25 = arith.constant 0 : index
    %65 = vector.load %arg6[%c96, %c0_25] : memref<216x512xbf16, #tpu.memory_space<vmem>>, vector<8x256xbf16>
    tpu.vector_store %arg6[%c96, %c0_25], %60 {strides = array<i32>} : memref<216x512xbf16, #tpu.memory_space<vmem>>, vector<8x256xbf16>,
    %c168 = arith.constant 168 : index
    %c0_26 = arith.constant 0 : index
    %66 = vector.load %arg6[%c168, %c0_26] : memref<216x512xbf16, #tpu.memory_space<vmem>>, vector<8x256xbf16>
    tpu.vector_store %arg6[%c168, %c0_26], %63 {strides = array<i32>} : memref<216x512xbf16, #tpu.memory_space<vmem>>, vector<8x256xbf16>,
    %67 = arith.truncf %26 : vector<8x256xf32> to vector<8x256xbf16>
    %68 = arith.extf %67 : vector<8x256xbf16> to vector<8x256xf32>
    %69 = arith.subf %26, %68 : vector<8x256xf32>
    %70 = arith.truncf %69 : vector<8x256xf32> to vector<8x256xbf16>
    %c32 = arith.constant 32 : index
    %c0_27 = arith.constant 0 : index
    %71 = vector.load %arg6[%c32, %c0_27] : memref<216x512xbf16, #tpu.memory_space<vmem>>, vector<8x256xbf16>
    tpu.vector_store %arg6[%c32, %c0_27], %67 {strides = array<i32>} : memref<216x512xbf16, #tpu.memory_space<vmem>>, vector<8x256xbf16>,
    %c104 = arith.constant 104 : index
    %c0_28 = arith.constant 0 : index
    %72 = vector.load %arg6[%c104, %c0_28] : memref<216x512xbf16, #tpu.memory_space<vmem>>, vector<8x256xbf16>
    tpu.vector_store %arg6[%c104, %c0_28], %67 {strides = array<i32>} : memref<216x512xbf16, #tpu.memory_space<vmem>>, vector<8x256xbf16>,
    %c176 = arith.constant 176 : index
    %c0_29 = arith.constant 0 : index
    %73 = vector.load %arg6[%c176, %c0_29] : memref<216x512xbf16, #tpu.memory_space<vmem>>, vector<8x256xbf16>
    tpu.vector_store %arg6[%c176, %c0_29], %70 {strides = array<i32>} : memref<216x512xbf16, #tpu.memory_space<vmem>>, vector<8x256xbf16>,
    %c1_i32_30 = arith.constant 1 : i32
    %74 = tpu.dynamic_rotate %26 by %c1_i32_30 dim 1 : vector<8x256xf32>, i32 -> vector<8x256xf32>
    %c255_i32_31 = arith.constant 255 : i32
    %75 = tpu.dynamic_rotate %26 by %c255_i32_31 dim 1 : vector<8x256xf32>, i32 -> vector<8x256xf32>
    %76 = arith.select %24, %74, %75 : vector<8x256xi1>, vector<8x256xf32>
    %77 = arith.truncf %76 : vector<8x256xf32> to vector<8x256xbf16>
    %78 = arith.extf %77 : vector<8x256xbf16> to vector<8x256xf32>
    %79 = arith.subf %76, %78 : vector<8x256xf32>
    %80 = arith.truncf %79 : vector<8x256xf32> to vector<8x256xbf16>
    %c40 = arith.constant 40 : index
    %c0_32 = arith.constant 0 : index
    %81 = vector.load %arg6[%c40, %c0_32] : memref<216x512xbf16, #tpu.memory_space<vmem>>, vector<8x256xbf16>
    tpu.vector_store %arg6[%c40, %c0_32], %77 {strides = array<i32>} : memref<216x512xbf16, #tpu.memory_space<vmem>>, vector<8x256xbf16>,
    %c112 = arith.constant 112 : index
    %c0_33 = arith.constant 0 : index
    %82 = vector.load %arg6[%c112, %c0_33] : memref<216x512xbf16, #tpu.memory_space<vmem>>, vector<8x256xbf16>
    tpu.vector_store %arg6[%c112, %c0_33], %77 {strides = array<i32>} : memref<216x512xbf16, #tpu.memory_space<vmem>>, vector<8x256xbf16>,
    %c184 = arith.constant 184 : index
    %c0_34 = arith.constant 0 : index
    %83 = vector.load %arg6[%c184, %c0_34] : memref<216x512xbf16, #tpu.memory_space<vmem>>, vector<8x256xbf16>
    tpu.vector_store %arg6[%c184, %c0_34], %80 {strides = array<i32>} : memref<216x512xbf16, #tpu.memory_space<vmem>>, vector<8x256xbf16>,
    %c16_i32_35 = arith.constant 16 : i32
    %84 = tpu.dynamic_rotate %26 by %c16_i32_35 dim 1 : vector<8x256xf32>, i32 -> vector<8x256xf32>
    %c240_i32_36 = arith.constant 240 : i32
    %85 = tpu.dynamic_rotate %26 by %c240_i32_36 dim 1 : vector<8x256xf32>, i32 -> vector<8x256xf32>
    %86 = arith.select %4, %84, %85 : vector<8x256xi1>, vector<8x256xf32>
    %c1_i32_37 = arith.constant 1 : i32
    %87 = tpu.dynamic_rotate %86 by %c1_i32_37 dim 1 : vector<8x256xf32>, i32 -> vector<8x256xf32>
    %c255_i32_38 = arith.constant 255 : i32
    %88 = tpu.dynamic_rotate %86 by %c255_i32_38 dim 1 : vector<8x256xf32>, i32 -> vector<8x256xf32>
    %89 = arith.select %22, %88, %87 : vector<8x256xi1>, vector<8x256xf32>
    %90 = arith.truncf %89 : vector<8x256xf32> to vector<8x256xbf16>
    %91 = arith.extf %90 : vector<8x256xbf16> to vector<8x256xf32>
    %92 = arith.subf %89, %91 : vector<8x256xf32>
    %93 = arith.truncf %92 : vector<8x256xf32> to vector<8x256xbf16>
    %c48 = arith.constant 48 : index
    %c0_39 = arith.constant 0 : index
    %94 = vector.load %arg6[%c48, %c0_39] : memref<216x512xbf16, #tpu.memory_space<vmem>>, vector<8x256xbf16>
    tpu.vector_store %arg6[%c48, %c0_39], %90 {strides = array<i32>} : memref<216x512xbf16, #tpu.memory_space<vmem>>, vector<8x256xbf16>,
    %c120 = arith.constant 120 : index
    %c0_40 = arith.constant 0 : index
    %95 = vector.load %arg6[%c120, %c0_40] : memref<216x512xbf16, #tpu.memory_space<vmem>>, vector<8x256xbf16>
    tpu.vector_store %arg6[%c120, %c0_40], %90 {strides = array<i32>} : memref<216x512xbf16, #tpu.memory_space<vmem>>, vector<8x256xbf16>,
    %c192 = arith.constant 192 : index
    %c0_41 = arith.constant 0 : index
    %96 = vector.load %arg6[%c192, %c0_41] : memref<216x512xbf16, #tpu.memory_space<vmem>>, vector<8x256xbf16>
    tpu.vector_store %arg6[%c192, %c0_41], %93 {strides = array<i32>} : memref<216x512xbf16, #tpu.memory_space<vmem>>, vector<8x256xbf16>,
    %97 = arith.truncf %86 : vector<8x256xf32> to vector<8x256xbf16>
    %98 = arith.extf %97 : vector<8x256xbf16> to vector<8x256xf32>
    %99 = arith.subf %86, %98 : vector<8x256xf32>
    %100 = arith.truncf %99 : vector<8x256xf32> to vector<8x256xbf16>
    %c56 = arith.constant 56 : index
    %c0_42 = arith.constant 0 : index
    %101 = vector.load %arg6[%c56, %c0_42] : memref<216x512xbf16, #tpu.memory_space<vmem>>, vector<8x256xbf16>
    tpu.vector_store %arg6[%c56, %c0_42], %97 {strides = array<i32>} : memref<216x512xbf16, #tpu.memory_space<vmem>>, vector<8x256xbf16>,
    %c128 = arith.constant 128 : index
    %c0_43 = arith.constant 0 : index
    %102 = vector.load %arg6[%c128, %c0_43] : memref<216x512xbf16, #tpu.memory_space<vmem>>, vector<8x256xbf16>
    tpu.vector_store %arg6[%c128, %c0_43], %97 {strides = array<i32>} : memref<216x512xbf16, #tpu.memory_space<vmem>>, vector<8x256xbf16>,
    %c200 = arith.constant 200 : index
    %c0_44 = arith.constant 0 : index
    %103 = vector.load %arg6[%c200, %c0_44] : memref<216x512xbf16, #tpu.memory_space<vmem>>, vector<8x256xbf16>
    tpu.vector_store %arg6[%c200, %c0_44], %100 {strides = array<i32>} : memref<216x512xbf16, #tpu.memory_space<vmem>>, vector<8x256xbf16>,
    %c1_i32_45 = arith.constant 1 : i32
    %104 = tpu.dynamic_rotate %86 by %c1_i32_45 dim 1 : vector<8x256xf32>, i32 -> vector<8x256xf32>
    %c255_i32_46 = arith.constant 255 : i32
    %105 = tpu.dynamic_rotate %86 by %c255_i32_46 dim 1 : vector<8x256xf32>, i32 -> vector<8x256xf32>
    %106 = arith.select %24, %104, %105 : vector<8x256xi1>, vector<8x256xf32>
    %107 = arith.truncf %106 : vector<8x256xf32> to vector<8x256xbf16>
    %108 = arith.extf %107 : vector<8x256xbf16> to vector<8x256xf32>
    %109 = arith.subf %106, %108 : vector<8x256xf32>
    %110 = arith.truncf %109 : vector<8x256xf32> to vector<8x256xbf16>
    %c64 = arith.constant 64 : index
    %c0_47 = arith.constant 0 : index
    %111 = vector.load %arg6[%c64, %c0_47] : memref<216x512xbf16, #tpu.memory_space<vmem>>, vector<8x256xbf16>
    tpu.vector_store %arg6[%c64, %c0_47], %107 {strides = array<i32>} : memref<216x512xbf16, #tpu.memory_space<vmem>>, vector<8x256xbf16>,
    %c136 = arith.constant 136 : index
    %c0_48 = arith.constant 0 : index
    %112 = vector.load %arg6[%c136, %c0_48] : memref<216x512xbf16, #tpu.memory_space<vmem>>, vector<8x256xbf16>
    tpu.vector_store %arg6[%c136, %c0_48], %107 {strides = array<i32>} : memref<216x512xbf16, #tpu.memory_space<vmem>>, vector<8x256xbf16>,
    %c208 = arith.constant 208 : index
    %c0_49 = arith.constant 0 : index
    %113 = vector.load %arg6[%c208, %c0_49] : memref<216x512xbf16, #tpu.memory_space<vmem>>, vector<8x256xbf16>
    tpu.vector_store %arg6[%c208, %c0_49], %110 {strides = array<i32>} : memref<216x512xbf16, #tpu.memory_space<vmem>>, vector<8x256xbf16>,
    %c1 = arith.constant 1 : index
    %c0_50 = arith.constant 0 : index
    %c0_51 = arith.constant 0 : index
    %114 = vector.load %arg1[%c1, %c0_50, %c0_51] : memref<2x8x256xf32, #tpu.memory_space<vmem>>, vector<1x8x256xf32>
    %115 = vector.shape_cast %114 : vector<1x8x256xf32> to vector<8x256xf32>
    %c16_i32_52 = arith.constant 16 : i32
    %116 = tpu.dynamic_rotate %115 by %c16_i32_52 dim 1 : vector<8x256xf32>, i32 -> vector<8x256xf32>
    %c240_i32_53 = arith.constant 240 : i32
    %117 = tpu.dynamic_rotate %115 by %c240_i32_53 dim 1 : vector<8x256xf32>, i32 -> vector<8x256xf32>
    %118 = arith.select %2, %117, %116 : vector<8x256xi1>, vector<8x256xf32>
    %c1_i32_54 = arith.constant 1 : i32
    %119 = tpu.dynamic_rotate %118 by %c1_i32_54 dim 1 : vector<8x256xf32>, i32 -> vector<8x256xf32>
    %c255_i32_55 = arith.constant 255 : i32
    %120 = tpu.dynamic_rotate %118 by %c255_i32_55 dim 1 : vector<8x256xf32>, i32 -> vector<8x256xf32>
    %121 = arith.select %22, %120, %119 : vector<8x256xi1>, vector<8x256xf32>
    %122 = arith.truncf %121 : vector<8x256xf32> to vector<8x256xbf16>
    %123 = arith.extf %122 : vector<8x256xbf16> to vector<8x256xf32>
    %124 = arith.subf %121, %123 : vector<8x256xf32>
    %125 = arith.truncf %124 : vector<8x256xf32> to vector<8x256xbf16>
    %c0_56 = arith.constant 0 : index
    %c256 = arith.constant 256 : index
    %126 = vector.load %arg6[%c0_56, %c256] : memref<216x512xbf16, #tpu.memory_space<vmem>>, vector<8x256xbf16>
    tpu.vector_store %arg6[%c0_56, %c256], %122 {strides = array<i32>} : memref<216x512xbf16, #tpu.memory_space<vmem>>, vector<8x256xbf16>,
    %c72_57 = arith.constant 72 : index
    %c256_58 = arith.constant 256 : index
    %127 = vector.load %arg6[%c72_57, %c256_58] : memref<216x512xbf16, #tpu.memory_space<vmem>>, vector<8x256xbf16>
    tpu.vector_store %arg6[%c72_57, %c256_58], %122 {strides = array<i32>} : memref<216x512xbf16, #tpu.memory_space<vmem>>, vector<8x256xbf16>,
    %c144_59 = arith.constant 144 : index
    %c256_60 = arith.constant 256 : index
    %128 = vector.load %arg6[%c144_59, %c256_60] : memref<216x512xbf16, #tpu.memory_space<vmem>>, vector<8x256xbf16>
    tpu.vector_store %arg6[%c144_59, %c256_60], %125 {strides = array<i32>} : memref<216x512xbf16, #tpu.memory_space<vmem>>, vector<8x256xbf16>,
    %129 = arith.truncf %118 : vector<8x256xf32> to vector<8x256xbf16>
    %130 = arith.extf %129 : vector<8x256xbf16> to vector<8x256xf32>
    %131 = arith.subf %118, %130 : vector<8x256xf32>
    %132 = arith.truncf %131 : vector<8x256xf32> to vector<8x256xbf16>
    %c8_61 = arith.constant 8 : index
    %c256_62 = arith.constant 256 : index
    %133 = vector.load %arg6[%c8_61, %c256_62] : memref<216x512xbf16, #tpu.memory_space<vmem>>, vector<8x256xbf16>
    tpu.vector_store %arg6[%c8_61, %c256_62], %129 {strides = array<i32>} : memref<216x512xbf16, #tpu.memory_space<vmem>>, vector<8x256xbf16>,
    %c80_63 = arith.constant 80 : index
    %c256_64 = arith.constant 256 : index
    %134 = vector.load %arg6[%c80_63, %c256_64] : memref<216x512xbf16, #tpu.memory_space<vmem>>, vector<8x256xbf16>
    tpu.vector_store %arg6[%c80_63, %c256_64], %129 {strides = array<i32>} : memref<216x512xbf16, #tpu.memory_space<vmem>>, vector<8x256xbf16>,
    %c152_65 = arith.constant 152 : index
    %c256_66 = arith.constant 256 : index
    %135 = vector.load %arg6[%c152_65, %c256_66] : memref<216x512xbf16, #tpu.memory_space<vmem>>, vector<8x256xbf16>
    tpu.vector_store %arg6[%c152_65, %c256_66], %132 {strides = array<i32>} : memref<216x512xbf16, #tpu.memory_space<vmem>>, vector<8x256xbf16>,
    %c1_i32_67 = arith.constant 1 : i32
    %136 = tpu.dynamic_rotate %118 by %c1_i32_67 dim 1 : vector<8x256xf32>, i32 -> vector<8x256xf32>
    %c255_i32_68 = arith.constant 255 : i32
    %137 = tpu.dynamic_rotate %118 by %c255_i32_68 dim 1 : vector<8x256xf32>, i32 -> vector<8x256xf32>
    %138 = arith.select %24, %136, %137 : vector<8x256xi1>, vector<8x256xf32>
    %139 = arith.truncf %138 : vector<8x256xf32> to vector<8x256xbf16>
    %140 = arith.extf %139 : vector<8x256xbf16> to vector<8x256xf32>
    %141 = arith.subf %138, %140 : vector<8x256xf32>
    %142 = arith.truncf %141 : vector<8x256xf32> to vector<8x256xbf16>
    %c16_69 = arith.constant 16 : index
    %c256_70 = arith.constant 256 : index
    %143 = vector.load %arg6[%c16_69, %c256_70] : memref<216x512xbf16, #tpu.memory_space<vmem>>, vector<8x256xbf16>
    tpu.vector_store %arg6[%c16_69, %c256_70], %139 {strides = array<i32>} : memref<216x512xbf16, #tpu.memory_space<vmem>>, vector<8x256xbf16>,
    %c88_71 = arith.constant 88 : index
    %c256_72 = arith.constant 256 : index
    %144 = vector.load %arg6[%c88_71, %c256_72] : memref<216x512xbf16, #tpu.memory_space<vmem>>, vector<8x256xbf16>
    tpu.vector_store %arg6[%c88_71, %c256_72], %139 {strides = array<i32>} : memref<216x512xbf16, #tpu.memory_space<vmem>>, vector<8x256xbf16>,
    %c160_73 = arith.constant 160 : index
    %c256_74 = arith.constant 256 : index
    %145 = vector.load %arg6[%c160_73, %c256_74] : memref<216x512xbf16, #tpu.memory_space<vmem>>, vector<8x256xbf16>
    tpu.vector_store %arg6[%c160_73, %c256_74], %142 {strides = array<i32>} : memref<216x512xbf16, #tpu.memory_space<vmem>>, vector<8x256xbf16>,
    %c1_i32_75 = arith.constant 1 : i32
    %146 = tpu.dynamic_rotate %115 by %c1_i32_75 dim 1 : vector<8x256xf32>, i32 -> vector<8x256xf32>
    %c255_i32_76 = arith.constant 255 : i32
    %147 = tpu.dynamic_rotate %115 by %c255_i32_76 dim 1 : vector<8x256xf32>, i32 -> vector<8x256xf32>
    %148 = arith.select %22, %147, %146 : vector<8x256xi1>, vector<8x256xf32>
    %149 = arith.truncf %148 : vector<8x256xf32> to vector<8x256xbf16>
    %150 = arith.extf %149 : vector<8x256xbf16> to vector<8x256xf32>
    %151 = arith.subf %148, %150 : vector<8x256xf32>
    %152 = arith.truncf %151 : vector<8x256xf32> to vector<8x256xbf16>
    %c24_77 = arith.constant 24 : index
    %c256_78 = arith.constant 256 : index
    %153 = vector.load %arg6[%c24_77, %c256_78] : memref<216x512xbf16, #tpu.memory_space<vmem>>, vector<8x256xbf16>
    tpu.vector_store %arg6[%c24_77, %c256_78], %149 {strides = array<i32>} : memref<216x512xbf16, #tpu.memory_space<vmem>>, vector<8x256xbf16>,
    %c96_79 = arith.constant 96 : index
    %c256_80 = arith.constant 256 : index
    %154 = vector.load %arg6[%c96_79, %c256_80] : memref<216x512xbf16, #tpu.memory_space<vmem>>, vector<8x256xbf16>
    tpu.vector_store %arg6[%c96_79, %c256_80], %149 {strides = array<i32>} : memref<216x512xbf16, #tpu.memory_space<vmem>>, vector<8x256xbf16>,
    %c168_81 = arith.constant 168 : index
    %c256_82 = arith.constant 256 : index
    %155 = vector.load %arg6[%c168_81, %c256_82] : memref<216x512xbf16, #tpu.memory_space<vmem>>, vector<8x256xbf16>
    tpu.vector_store %arg6[%c168_81, %c256_82], %152 {strides = array<i32>} : memref<216x512xbf16, #tpu.memory_space<vmem>>, vector<8x256xbf16>,
    %156 = arith.truncf %115 : vector<8x256xf32> to vector<8x256xbf16>
    %157 = arith.extf %156 : vector<8x256xbf16> to vector<8x256xf32>
    %158 = arith.subf %115, %157 : vector<8x256xf32>
    %159 = arith.truncf %158 : vector<8x256xf32> to vector<8x256xbf16>
    %c32_83 = arith.constant 32 : index
    %c256_84 = arith.constant 256 : index
    %160 = vector.load %arg6[%c32_83, %c256_84] : memref<216x512xbf16, #tpu.memory_space<vmem>>, vector<8x256xbf16>
    tpu.vector_store %arg6[%c32_83, %c256_84], %156 {strides = array<i32>} : memref<216x512xbf16, #tpu.memory_space<vmem>>, vector<8x256xbf16>,
    %c104_85 = arith.constant 104 : index
    %c256_86 = arith.constant 256 : index
    %161 = vector.load %arg6[%c104_85, %c256_86] : memref<216x512xbf16, #tpu.memory_space<vmem>>, vector<8x256xbf16>
    tpu.vector_store %arg6[%c104_85, %c256_86], %156 {strides = array<i32>} : memref<216x512xbf16, #tpu.memory_space<vmem>>, vector<8x256xbf16>,
    %c176_87 = arith.constant 176 : index
    %c256_88 = arith.constant 256 : index
    %162 = vector.load %arg6[%c176_87, %c256_88] : memref<216x512xbf16, #tpu.memory_space<vmem>>, vector<8x256xbf16>
    tpu.vector_store %arg6[%c176_87, %c256_88], %159 {strides = array<i32>} : memref<216x512xbf16, #tpu.memory_space<vmem>>, vector<8x256xbf16>,
    %c1_i32_89 = arith.constant 1 : i32
    %163 = tpu.dynamic_rotate %115 by %c1_i32_89 dim 1 : vector<8x256xf32>, i32 -> vector<8x256xf32>
    %c255_i32_90 = arith.constant 255 : i32
    %164 = tpu.dynamic_rotate %115 by %c255_i32_90 dim 1 : vector<8x256xf32>, i32 -> vector<8x256xf32>
    %165 = arith.select %24, %163, %164 : vector<8x256xi1>, vector<8x256xf32>
    %166 = arith.truncf %165 : vector<8x256xf32> to vector<8x256xbf16>
    %167 = arith.extf %166 : vector<8x256xbf16> to vector<8x256xf32>
    %168 = arith.subf %165, %167 : vector<8x256xf32>
    %169 = arith.truncf %168 : vector<8x256xf32> to vector<8x256xbf16>
    %c40_91 = arith.constant 40 : index
    %c256_92 = arith.constant 256 : index
    %170 = vector.load %arg6[%c40_91, %c256_92] : memref<216x512xbf16, #tpu.memory_space<vmem>>, vector<8x256xbf16>
    tpu.vector_store %arg6[%c40_91, %c256_92], %166 {strides = array<i32>} : memref<216x512xbf16, #tpu.memory_space<vmem>>, vector<8x256xbf16>,
    %c112_93 = arith.constant 112 : index
    %c256_94 = arith.constant 256 : index
    %171 = vector.load %arg6[%c112_93, %c256_94] : memref<216x512xbf16, #tpu.memory_space<vmem>>, vector<8x256xbf16>
    tpu.vector_store %arg6[%c112_93, %c256_94], %166 {strides = array<i32>} : memref<216x512xbf16, #tpu.memory_space<vmem>>, vector<8x256xbf16>,
    %c184_95 = arith.constant 184 : index
    %c256_96 = arith.constant 256 : index
    %172 = vector.load %arg6[%c184_95, %c256_96] : memref<216x512xbf16, #tpu.memory_space<vmem>>, vector<8x256xbf16>
    tpu.vector_store %arg6[%c184_95, %c256_96], %169 {strides = array<i32>} : memref<216x512xbf16, #tpu.memory_space<vmem>>, vector<8x256xbf16>,
    %c16_i32_97 = arith.constant 16 : i32
    %173 = tpu.dynamic_rotate %115 by %c16_i32_97 dim 1 : vector<8x256xf32>, i32 -> vector<8x256xf32>
    %c240_i32_98 = arith.constant 240 : i32
    %174 = tpu.dynamic_rotate %115 by %c240_i32_98 dim 1 : vector<8x256xf32>, i32 -> vector<8x256xf32>
    %175 = arith.select %4, %173, %174 : vector<8x256xi1>, vector<8x256xf32>
    %c1_i32_99 = arith.constant 1 : i32
    %176 = tpu.dynamic_rotate %175 by %c1_i32_99 dim 1 : vector<8x256xf32>, i32 -> vector<8x256xf32>
    %c255_i32_100 = arith.constant 255 : i32
    %177 = tpu.dynamic_rotate %175 by %c255_i32_100 dim 1 : vector<8x256xf32>, i32 -> vector<8x256xf32>
    %178 = arith.select %22, %177, %176 : vector<8x256xi1>, vector<8x256xf32>
    %179 = arith.truncf %178 : vector<8x256xf32> to vector<8x256xbf16>
    %180 = arith.extf %179 : vector<8x256xbf16> to vector<8x256xf32>
    %181 = arith.subf %178, %180 : vector<8x256xf32>
    %182 = arith.truncf %181 : vector<8x256xf32> to vector<8x256xbf16>
    %c48_101 = arith.constant 48 : index
    %c256_102 = arith.constant 256 : index
    %183 = vector.load %arg6[%c48_101, %c256_102] : memref<216x512xbf16, #tpu.memory_space<vmem>>, vector<8x256xbf16>
    tpu.vector_store %arg6[%c48_101, %c256_102], %179 {strides = array<i32>} : memref<216x512xbf16, #tpu.memory_space<vmem>>, vector<8x256xbf16>,
    %c120_103 = arith.constant 120 : index
    %c256_104 = arith.constant 256 : index
    %184 = vector.load %arg6[%c120_103, %c256_104] : memref<216x512xbf16, #tpu.memory_space<vmem>>, vector<8x256xbf16>
    tpu.vector_store %arg6[%c120_103, %c256_104], %179 {strides = array<i32>} : memref<216x512xbf16, #tpu.memory_space<vmem>>, vector<8x256xbf16>,
    %c192_105 = arith.constant 192 : index
    %c256_106 = arith.constant 256 : index
    %185 = vector.load %arg6[%c192_105, %c256_106] : memref<216x512xbf16, #tpu.memory_space<vmem>>, vector<8x256xbf16>
    tpu.vector_store %arg6[%c192_105, %c256_106], %182 {strides = array<i32>} : memref<216x512xbf16, #tpu.memory_space<vmem>>, vector<8x256xbf16>,
    %186 = arith.truncf %175 : vector<8x256xf32> to vector<8x256xbf16>
    %187 = arith.extf %186 : vector<8x256xbf16> to vector<8x256xf32>
    %188 = arith.subf %175, %187 : vector<8x256xf32>
    %189 = arith.truncf %188 : vector<8x256xf32> to vector<8x256xbf16>
    %c56_107 = arith.constant 56 : index
    %c256_108 = arith.constant 256 : index
    %190 = vector.load %arg6[%c56_107, %c256_108] : memref<216x512xbf16, #tpu.memory_space<vmem>>, vector<8x256xbf16>
    tpu.vector_store %arg6[%c56_107, %c256_108], %186 {strides = array<i32>} : memref<216x512xbf16, #tpu.memory_space<vmem>>, vector<8x256xbf16>,
    %c128_109 = arith.constant 128 : index
    %c256_110 = arith.constant 256 : index
    %191 = vector.load %arg6[%c128_109, %c256_110] : memref<216x512xbf16, #tpu.memory_space<vmem>>, vector<8x256xbf16>
    tpu.vector_store %arg6[%c128_109, %c256_110], %186 {strides = array<i32>} : memref<216x512xbf16, #tpu.memory_space<vmem>>, vector<8x256xbf16>,
    %c200_111 = arith.constant 200 : index
    %c256_112 = arith.constant 256 : index
    %192 = vector.load %arg6[%c200_111, %c256_112] : memref<216x512xbf16, #tpu.memory_space<vmem>>, vector<8x256xbf16>
    tpu.vector_store %arg6[%c200_111, %c256_112], %189 {strides = array<i32>} : memref<216x512xbf16, #tpu.memory_space<vmem>>, vector<8x256xbf16>,
    %c1_i32_113 = arith.constant 1 : i32
    %193 = tpu.dynamic_rotate %175 by %c1_i32_113 dim 1 : vector<8x256xf32>, i32 -> vector<8x256xf32>
    %c255_i32_114 = arith.constant 255 : i32
    %194 = tpu.dynamic_rotate %175 by %c255_i32_114 dim 1 : vector<8x256xf32>, i32 -> vector<8x256xf32>
    %195 = arith.select %24, %193, %194 : vector<8x256xi1>, vector<8x256xf32>
    %196 = arith.truncf %195 : vector<8x256xf32> to vector<8x256xbf16>
    %197 = arith.extf %196 : vector<8x256xbf16> to vector<8x256xf32>
    %198 = arith.subf %195, %197 : vector<8x256xf32>
    %199 = arith.truncf %198 : vector<8x256xf32> to vector<8x256xbf16>
    %c64_115 = arith.constant 64 : index
    %c256_116 = arith.constant 256 : index
    %200 = vector.load %arg6[%c64_115, %c256_116] : memref<216x512xbf16, #tpu.memory_space<vmem>>, vector<8x256xbf16>
    tpu.vector_store %arg6[%c64_115, %c256_116], %196 {strides = array<i32>} : memref<216x512xbf16, #tpu.memory_space<vmem>>, vector<8x256xbf16>,
    %c136_117 = arith.constant 136 : index
    %c256_118 = arith.constant 256 : index
    %201 = vector.load %arg6[%c136_117, %c256_118] : memref<216x512xbf16, #tpu.memory_space<vmem>>, vector<8x256xbf16>
    tpu.vector_store %arg6[%c136_117, %c256_118], %196 {strides = array<i32>} : memref<216x512xbf16, #tpu.memory_space<vmem>>, vector<8x256xbf16>,
    %c208_119 = arith.constant 208 : index
    %c256_120 = arith.constant 256 : index
    %202 = vector.load %arg6[%c208_119, %c256_120] : memref<216x512xbf16, #tpu.memory_space<vmem>>, vector<8x256xbf16>
    tpu.vector_store %arg6[%c208_119, %c256_120], %199 {strides = array<i32>} : memref<216x512xbf16, #tpu.memory_space<vmem>>, vector<8x256xbf16>,
    %c0_121 = arith.constant 0 : index
    %c0_122 = arith.constant 0 : index
    %203 = vector.load %arg2[%c0_121, %c0_122] : memref<8x216xbf16, #tpu.memory_space<vmem>>, vector<8x216xbf16>
    %c0_123 = arith.constant 0 : index
    %c0_124 = arith.constant 0 : index
    %204 = vector.load %arg6[%c0_123, %c0_124] : memref<216x512xbf16, #tpu.memory_space<vmem>>, vector<216x512xbf16>
    %cst = arith.constant dense<0.000000e+00> : vector<8x512xf32>
    %205 = tpu.matmul %203, %204, %cst {dimension_numbers = #tpu.dot_dimension_numbers<[1], [0], [0], [1], [0, 0, 1, 1], [], []>} : vector<8x216xbf16>, vector<216x512xbf16>, vector<8x512xf32> -> vector<8x512xf32>
    %c0_125 = arith.constant 0 : index
    %c0_126 = arith.constant 0 : index
    %206 = vector.load %arg3[%c0_125, %c0_126] : memref<8x1xf32, #tpu.memory_space<vmem>>, vector<8x1xf32>
    %c0_127 = arith.constant 0 : index
    %c0_128 = arith.constant 0 : index
    %207 = vector.load %arg4[%c0_127, %c0_128] : memref<8x1xf32, #tpu.memory_space<vmem>>, vector<8x1xf32>
    %208 = vector.extract_strided_slice %205 {offsets = [0, 0], sizes = [8, 256], strides = [1, 1]} : vector<8x512xf32> to vector<8x256xf32>
    %cst_129 = arith.constant dense<0.000000e+00> : vector<8xf32>
    %209 = vector.multi_reduction <add>, %208, %cst_129 [1] : vector<8x256xf32> to vector<8xf32>
    %210 = vector.shape_cast %209 : vector<8xf32> to vector<8x1xf32>
    %211 = arith.mulf %208, %208 : vector<8x256xf32>
    %cst_130 = arith.constant dense<0.000000e+00> : vector<8xf32>
    %212 = vector.multi_reduction <add>, %211, %cst_130 [1] : vector<8x256xf32> to vector<8xf32>
    %213 = vector.shape_cast %212 : vector<8xf32> to vector<8x1xf32>
    %cst_131 = arith.constant 3.906250e-03 : f32
    %214 = vector.broadcast %cst_131 : f32 to vector<8x1xf32>
    %215 = arith.mulf %210, %214 : vector<8x1xf32>
    %cst_132 = arith.constant 3.906250e-03 : f32
    %216 = vector.broadcast %cst_132 : f32 to vector<8x1xf32>
    %217 = arith.mulf %213, %216 : vector<8x1xf32>
    %218 = arith.mulf %215, %215 : vector<8x1xf32>
    %219 = arith.subf %217, %218 : vector<8x1xf32>
    %cst_133 = arith.constant 0.000000e+00 : f32
    %220 = vector.broadcast %cst_133 : f32 to vector<8x1xf32>
    %221 = arith.maximumf %219, %220 : vector<8x1xf32>
    %222 = vector.broadcast %215 : vector<8x1xf32> to vector<8x256xf32>
    %223 = arith.subf %208, %222 : vector<8x256xf32>
    %cst_134 = arith.constant 9.99999974E-6 : f32
    %224 = vector.broadcast %cst_134 : f32 to vector<8x1xf32>
    %225 = arith.addf %221, %224 : vector<8x1xf32>
    %226 = math.rsqrt %225 : vector<8x1xf32>
    %227 = vector.broadcast %226 : vector<8x1xf32> to vector<8x256xf32>
    %228 = arith.mulf %223, %227 : vector<8x256xf32>
    %229 = vector.broadcast %206 : vector<8x1xf32> to vector<8x256xf32>
    %230 = arith.mulf %228, %229 : vector<8x256xf32>
    %231 = vector.broadcast %207 : vector<8x1xf32> to vector<8x256xf32>
    %232 = arith.addf %230, %231 : vector<8x256xf32>
    %cst_135 = arith.constant 0.000000e+00 : f32
    %233 = vector.broadcast %cst_135 : f32 to vector<8x256xf32>
    %234 = arith.cmpf ogt, %232, %233 : vector<8x256xf32>
    %235 = math.exp %232 : vector<8x256xf32>
    %cst_136 = arith.constant 1.000000e+00 : f32
    %236 = vector.broadcast %cst_136 : f32 to vector<8x256xf32>
    %237 = arith.subf %235, %236 : vector<8x256xf32>
    %cst_137 = arith.constant 1.67326319 : f32
    %238 = vector.broadcast %cst_137 : f32 to vector<8x256xf32>
    %239 = arith.mulf %238, %237 : vector<8x256xf32>
    %240 = arith.select %234, %232, %239 : vector<8x256xi1>, vector<8x256xf32>
    %cst_138 = arith.constant 1.05070102 : f32
    %241 = vector.broadcast %cst_138 : f32 to vector<8x256xf32>
    %242 = arith.mulf %241, %240 : vector<8x256xf32>
    %c0_139 = arith.constant 0 : index
    %c0_140 = arith.constant 0 : index
    %c0_141 = arith.constant 0 : index
    %243 = vector.load %arg5[%c0_139, %c0_140, %c0_141] : memref<2x8x256xf32, #tpu.memory_space<vmem>>, vector<1x8x256xf32>
    %244 = vector.shape_cast %243 : vector<1x8x256xf32> to vector<8x256xf32>
    %245 = vector.shape_cast %242 : vector<8x256xf32> to vector<1x8x256xf32>
    tpu.vector_store %arg5[%c0_139, %c0_140, %c0_141], %245 {strides = array<i32>} : memref<2x8x256xf32, #tpu.memory_space<vmem>>, vector<1x8x256xf32>,
    %246 = vector.extract_strided_slice %205 {offsets = [0, 256], sizes = [8, 256], strides = [1, 1]} : vector<8x512xf32> to vector<8x256xf32>
    %cst_142 = arith.constant dense<0.000000e+00> : vector<8xf32>
    %247 = vector.multi_reduction <add>, %246, %cst_142 [1] : vector<8x256xf32> to vector<8xf32>
    %248 = vector.shape_cast %247 : vector<8xf32> to vector<8x1xf32>
    %249 = arith.mulf %246, %246 : vector<8x256xf32>
    %cst_143 = arith.constant dense<0.000000e+00> : vector<8xf32>
    %250 = vector.multi_reduction <add>, %249, %cst_143 [1] : vector<8x256xf32> to vector<8xf32>
    %251 = vector.shape_cast %250 : vector<8xf32> to vector<8x1xf32>
    %cst_144 = arith.constant 3.906250e-03 : f32
    %252 = vector.broadcast %cst_144 : f32 to vector<8x1xf32>
    %253 = arith.mulf %248, %252 : vector<8x1xf32>
    %cst_145 = arith.constant 3.906250e-03 : f32
    %254 = vector.broadcast %cst_145 : f32 to vector<8x1xf32>
    %255 = arith.mulf %251, %254 : vector<8x1xf32>
    %256 = arith.mulf %253, %253 : vector<8x1xf32>
    %257 = arith.subf %255, %256 : vector<8x1xf32>
    %cst_146 = arith.constant 0.000000e+00 : f32
    %258 = vector.broadcast %cst_146 : f32 to vector<8x1xf32>
    %259 = arith.maximumf %257, %258 : vector<8x1xf32>
    %260 = vector.broadcast %253 : vector<8x1xf32> to vector<8x256xf32>
    %261 = arith.subf %246, %260 : vector<8x256xf32>
    %cst_147 = arith.constant 9.99999974E-6 : f32
    %262 = vector.broadcast %cst_147 : f32 to vector<8x1xf32>
    %263 = arith.addf %259, %262 : vector<8x1xf32>
    %264 = math.rsqrt %263 : vector<8x1xf32>
    %265 = vector.broadcast %264 : vector<8x1xf32> to vector<8x256xf32>
    %266 = arith.mulf %261, %265 : vector<8x256xf32>
    %267 = vector.broadcast %206 : vector<8x1xf32> to vector<8x256xf32>
    %268 = arith.mulf %266, %267 : vector<8x256xf32>
    %269 = vector.broadcast %207 : vector<8x1xf32> to vector<8x256xf32>
    %270 = arith.addf %268, %269 : vector<8x256xf32>
    %cst_148 = arith.constant 0.000000e+00 : f32
    %271 = vector.broadcast %cst_148 : f32 to vector<8x256xf32>
    %272 = arith.cmpf ogt, %270, %271 : vector<8x256xf32>
    %273 = math.exp %270 : vector<8x256xf32>
    %cst_149 = arith.constant 1.000000e+00 : f32
    %274 = vector.broadcast %cst_149 : f32 to vector<8x256xf32>
    %275 = arith.subf %273, %274 : vector<8x256xf32>
    %cst_150 = arith.constant 1.67326319 : f32
    %276 = vector.broadcast %cst_150 : f32 to vector<8x256xf32>
    %277 = arith.mulf %276, %275 : vector<8x256xf32>
    %278 = arith.select %272, %270, %277 : vector<8x256xi1>, vector<8x256xf32>
    %cst_151 = arith.constant 1.05070102 : f32
    %279 = vector.broadcast %cst_151 : f32 to vector<8x256xf32>
    %280 = arith.mulf %279, %278 : vector<8x256xf32>
    %c1_152 = arith.constant 1 : index
    %c0_153 = arith.constant 0 : index
    %c0_154 = arith.constant 0 : index
    %281 = vector.load %arg5[%c1_152, %c0_153, %c0_154] : memref<2x8x256xf32, #tpu.memory_space<vmem>>, vector<1x8x256xf32>
    %282 = vector.shape_cast %281 : vector<1x8x256xf32> to vector<8x256xf32>
    %283 = vector.shape_cast %280 : vector<8x256xf32> to vector<1x8x256xf32>
    tpu.vector_store %arg5[%c1_152, %c0_153, %c0_154], %283 {strides = array<i32>} : memref<2x8x256xf32, #tpu.memory_space<vmem>>, vector<1x8x256xf32>,
    return
  }
  func.func @transform_0(%arg0: i32) -> (i32, i32, i32) {
    %c0_i32 = arith.constant 0 : i32
    %c0_i32_0 = arith.constant 0 : i32
    %c0_i32_1 = arith.constant 0 : i32
    return %arg0, %c0_i32, %c0_i32_0 : i32, i32, i32
  }
  func.func @transform_1(%arg0: i32) -> (i32, i32) {
    %c0_i32 = arith.constant 0 : i32
    %c0_i32_0 = arith.constant 0 : i32
    %c0_i32_1 = arith.constant 0 : i32
    return %c0_i32, %c0_i32_0 : i32, i32
  }
  func.func @transform_2(%arg0: i32) -> (i32, i32) {
    %c0_i32 = arith.constant 0 : i32
    %c0_i32_0 = arith.constant 0 : i32
    %c0_i32_1 = arith.constant 0 : i32
    return %c0_i32, %c0_i32_0 : i32, i32
  }
  func.func @transform_3(%arg0: i32) -> (i32, i32) {
    %c0_i32 = arith.constant 0 : i32
    %c0_i32_0 = arith.constant 0 : i32
    %c0_i32_1 = arith.constant 0 : i32
    return %c0_i32, %c0_i32_0 : i32, i32
  }
  func.func @transform_4(%arg0: i32) -> (i32, i32, i32) {
    %c0_i32 = arith.constant 0 : i32
    %c0_i32_0 = arith.constant 0 : i32
    %c0_i32_1 = arith.constant 0 : i32
    return %arg0, %c0_i32, %c0_i32_0 : i32, i32, i32
  }
}

</mosaic_0001>

<bundles_post_ra>
// kernel: tpu_custom_call.1
= control target key start
LH: loop header
LB: loop body
LE: loop exit
PB: predicated region body
PF: predicated region fallthrough
CT: control target
= control target key end

     0   :  { %9 = vsyncpa [#allocation4], 0  ;;  %s1998_s0 = inlined_call_operand.hbm [shape: f32[2,8,256], index: 0, kind: input, shape index: {}]   ;;  %s1999_s1 = inlined_call_operand.vmem [shape: bf16[8,216], index: 1, kind: input, shape index: {}]   ;;  %s2000_s2 = inlined_call_operand.vmem [shape: f32[8,1], index: 2, kind: input, shape index: {}]   ;;  %s2001_s3 = inlined_call_operand.vmem [shape: f32[8,1], index: 3, kind: input, shape index: {}]   ;;  %s2002_s4 = inlined_call_operand.hbm [shape: f32[2,8,256], index: 4, kind: output, shape index: {}]  }
   0x1   :  { %10 = vsyncpa [#allocation5], 0  ;;  %s1418_s15 = smov [#allocation3]  }
   0x2   :  { %s16_s16 = sshll.u32 %s1418_s15, 4  ;;  %s17_s16 = int_to_ptr.vmem [resolvable:$true] %s16_s16 }
   0x3   :  { %s1382_s17 = scalar_lea.vmem %s17_s16, 512  ;;  %p1387_p1 = scmp.lt.s32.totalorder %s17_s16, %s17_s16 }
   0x4   :  { %p1383_p0 = scmp.ne.s32.totalorder %s17_s16, %s1382_s17  ;;  %p1388_p2 = scmp.lt.s32.totalorder %s1382_s17, %s1382_s17 }
   0x6   :  { %p1389_p3 = por %p1388_p2, %p1387_p1 }
   0x8   :  { %p1390_p4 = pnand %p1389_p3, %p1383_p0 }
   0xa   :  { %1393 = shalt.err (!%p1390_p4)
}
   0xb   :  { %s1419_s18 = smov 256   ;;  %s1420_s19 = smov 16  }
   0xc   :  { %22 = dma.hbm_to_vmem [thread:$0]  %s1998_s0, 512, %s17_s16, [#allocation4], %s1419_s18, %s1419_s18, %s1420_s19  }
   0xd   :  { %1414 = dma.done.wait [#allocation4], 512  }
   0xe   :  { %1415 = vsyncadd [#allocation4], 4294966784  ;;  %v1457_v0 = vld [vmem:[#allocation3] sm:$0xff]  ;;  %s1421_s22 = smov 112   ;;  %v1462_v1 = vld [vmem:[#allocation3 + $0x8] sm:$0xff]  ;;  %s1422_s0 = smov 1   ;;  %v33_v4 = vlaneseq }
   0xf   :  { %76 = vrot.lane.b32.xlu1 %v1457_v0, %s1421_s22  ;;  %70 = vrot.lane.b32.xlu0 %v1457_v0, %s1420_s19  ;;  %v1467_v2 = vld [vmem:[#allocation3 + $0x18] sm:$0xff]  ;;  %v1469_v3 = vld [vmem:[#allocation3 + $0x10] sm:$0xff]  ;;  %s1423_s23 = smov 127   ;;  %v1609_v46 = vld [vmem:[%s1999_s1] sm:$0xff]  ;;  %vm949_vm7 = vcmask 719872   ;;  %vm953_vm10 = vcmask 1043456  }
  0x10   :  { %v1493_v5 = vand.u32 127, %v33_v4  ;;  %2009 = vst [vmem:[#allocation9_spill] sm:$0xff] %v1609_v46  ;;  %v1193_v47 = vcombine.high %v1609_v46, %v1609_v46  ;;  %v483_v25 = vpack.c.bf16 %v1469_v3, %v1469_v3 }
  0x12   :  { %vm80_vm0 = vcmp.lt.s32.totalorder %v1493_v5, 112  ;;  %vm36_vm1 = vcmp.lt.s32.totalorder %v1493_v5, 16  ;;  %v35_v12 = vadd.s32 128, %v1493_v5  ;;  %vm89_vm3 = vcmp.lt.s32.totalorder %v1493_v5, 1  ;;  %1251 = vmatprep.mubr.msk.bf16.mxu0 %vm949_vm7, %v1193_v47  ;;  %1253 = vmatprep.mubr.msk.bf16.mxu1 %vm949_vm7, %v1193_v47 }
  0x13   :  { %78 = vrot.lane.b32.xlu1 %v1462_v1, %s1421_s22  ;;  %72 = vrot.lane.b32.xlu0 %v1462_v1, %s1420_s19  ;;  %vm96_vm4 = vcmp.lt.s32.totalorder %v1493_v5, 127  ;;  %v44_v52 = vand.u32 15, %v1493_v5 }
  0x14   :  { %vm39_vm2 = vcmp.ge.s32.totalorder %v35_v12, 240  ;;  %v51_v20 = vand.u32 15, %v35_v12 }
  0x15   :  { %vm1616_vm8 = vcmp.eq.s32.totalorder %v44_v52, 0  ;;  %vm1620_vm9 = vcmp.eq.s32.totalorder %v44_v52, 15 }
  0x16   :  { %vm1538_vm5 = vcmp.eq.s32.totalorder %v51_v20, 0  ;;  %vm1548_vm6 = vcmp.eq.s32.totalorder %v51_v20, 15 }
  0x17   :  { %349 = vrot.lane.b32.xlu1 %v1467_v2, %s1420_s19  ;;  %347 = vrot.lane.b32.xlu0 %v1469_v3, %s1420_s19 }
  0x1b   :  { %355 = vrot.lane.b32.xlu1 %v1467_v2, %s1421_s22  ;;  %353 = vrot.lane.b32.xlu0 %v1469_v3, %s1421_s22 }
  0x1f   :  { %174 = vrot.lane.b32.xlu1 %v1462_v1, %s1422_s0  ;;  %172 = vrot.lane.b32.xlu0 %v1457_v0, %s1422_s0 }
  0x23   :  { %180 = vrot.lane.b32.xlu1 %v1462_v1, %s1423_s23  ;;  %178 = vrot.lane.b32.xlu0 %v1457_v0, %s1423_s23 }
  0x27   :  { %448 = vrot.lane.b32.xlu1 %v1467_v2, %s1422_s0  ;;  %446 = vrot.lane.b32.xlu0 %v1469_v3, %s1422_s0 }
  0x2b   :  { %454 = vrot.lane.b32.xlu1 %v1467_v2, %s1423_s23  ;;  %452 = vrot.lane.b32.xlu0 %v1469_v3, %s1423_s23 }
  0x81   :  { %v77_v6 = vpop.permute.xlu1 %76  ;;  %v71_v7 = vpop.permute.xlu0 %70 }
  0x85   :  { %v79_v8 = vpop.permute.xlu1 %78  ;;  %v73_v9 = vpop.permute.xlu0 %72 }
  0x86   :  { %v1499_v10 = vsel %vm80_vm0, %v77_v6, %v79_v8  ;;  %v1503_v11 = vsel %vm36_vm1, %v71_v7, %v73_v9  ;;  %v82_v15 = vsel %vm80_vm0, %v79_v8, %v77_v6  ;;  %v75_v23 = vsel %vm36_vm1, %v73_v9, %v71_v7 }
  0x87   :  { %259 = vrot.lane.b32.xlu0 %v1499_v10, %s1422_s0  ;;  %87 = vrot.lane.b32.xlu1 %v1503_v11, %s1422_s0  ;;  %v1522_v19 = vsel %vm39_vm2, %v1503_v11, %v82_v15  ;;  %v1555_v31 = vsel %vm36_vm1, %v1499_v10, %v75_v23 }
  0x89   :  { %v350_v13 = vpop.permute.xlu1 %349  ;;  %v348_v14 = vpop.permute.xlu0 %347 }
  0x8a   :  { %v1546_v27 = vsel %vm36_vm1, %v348_v14, %v350_v13  ;;  %v352_v39 = vsel %vm36_vm1, %v350_v13, %v348_v14 }
  0x8b   :  { %265 = vrot.lane.b32.xlu0 %v1499_v10, %s1423_s23  ;;  %94 = vrot.lane.b32.xlu1 %v1503_v11, %s1423_s23 }
  0x8d   :  { %v356_v16 = vpop.permute.xlu1 %355  ;;  %v354_v17 = vpop.permute.xlu0 %353 }
  0x8e   :  { %v1518_v18 = vsel %vm80_vm0, %v354_v17, %v356_v16  ;;  %v358_v24 = vsel %vm80_vm0, %v356_v16, %v354_v17 }
  0x8f   :  { %261 = vrot.lane.b32.xlu1 %v1522_v19, %s1422_s0  ;;  %533 = vrot.lane.b32.xlu0 %v1518_v18, %s1422_s0  ;;  %v1559_v32 = vsel %vm39_vm2, %v1546_v27, %v358_v24  ;;  %v1586_v42 = vsel %vm36_vm1, %v1518_v18, %v352_v39 }
  0x91   :  { %v175_v21 = vpop.permute.xlu1 %174  ;;  %v173_v22 = vpop.permute.xlu0 %172 }
  0x92   :  { %v176_v26 = vsel %vm89_vm3, %v173_v22, %v175_v21  ;;  %v177_v55 = vsel %vm89_vm3, %v175_v21, %v173_v22 }
  0x93   :  { %267 = vrot.lane.b32.xlu1 %v1522_v19, %s1423_s23  ;;  %539 = vrot.lane.b32.xlu0 %v1518_v18, %s1423_s23 }
  0x95   :  { %v181_v29 = vpop.permute.xlu1 %180  ;;  %v179_v30 = vpop.permute.xlu0 %178 }
  0x96   :  { %v183_v33 = vsel %vm96_vm4, %v181_v29, %v179_v30  ;;  %v182_v58 = vsel %vm96_vm4, %v179_v30, %v181_v29 }
  0x97   :  { %535 = vrot.lane.b32.xlu1 %v1559_v32, %s1422_s0  ;;  %85 = vrot.lane.b32.xlu0 %v1555_v31, %s1422_s0  ;;  %v1569_v34 = vsel %vm1538_vm5, %v183_v33, %v176_v26  ;;  %v1573_v35 = vsel %vm1548_vm6, %v176_v26, %v183_v33  ;;  %v1654_v9 = vsel %vm1620_vm9, %v177_v55, %v182_v58 }
  0x98   :  { %v1319_v16 = vpack.c.bf16 %v1462_v1, %v1569_v34  ;;  %v1664_v17 = vsel %vm1616_vm8, %v182_v58, %v177_v55  ;;  %v209_v55 = vpack.c.bf16 %v1457_v0, %v1457_v0  ;;  %v484_v58 = vpack.c.bf16 %v1467_v2, %v1467_v2 }
  0x99   :  { %v449_v36 = vpop.permute.xlu1 %448  ;;  %v447_v37 = vpop.permute.xlu0 %446  ;;  %v1318_v23 = vpack.c.bf16 %v1457_v0, %v1664_v17 }
  0x9a   :  { %v450_v38 = vsel %vm89_vm3, %v447_v37, %v449_v36  ;;  %v451_v33 = vsel %vm89_vm3, %v449_v36, %v447_v37  ;;  %v210_v37 = vpack.c.bf16 %v1462_v1, %v1462_v1  ;;  %v1778_v5 = vunpack.c.l.bf16 %v209_v55 }
  0x9b   :  { %541 = vrot.lane.b32.xlu1 %v1559_v32, %s1423_s23  ;;  %92 = vrot.lane.b32.xlu0 %v1555_v31, %s1423_s23 }
  0x9d   :  { %v455_v40 = vpop.permute.xlu1 %454  ;;  %v453_v41 = vpop.permute.xlu0 %452 }
  0x9e   :  { %v457_v43 = vsel %vm96_vm4, %v455_v40, %v453_v41 }
  0x9f   :  { %363 = vrot.lane.b32.xlu1 %v1546_v27, %s1422_s0  ;;  %361 = vrot.lane.b32.xlu0 %v1586_v42, %s1422_s0  ;;  %v1596_v44 = vsel %vm1538_vm5, %v457_v43, %v450_v38  ;;  %v1600_v45 = vsel %vm1548_vm6, %v450_v38, %v457_v43  ;;  %v456_v38 = vsel %vm96_vm4, %v453_v41, %v455_v40 }
  0xa3   :  { %369 = vrot.lane.b32.xlu1 %v1546_v27, %s1423_s23  ;;  %367 = vrot.lane.b32.xlu0 %v1586_v42, %s1423_s23 }
  0xf9   :  { %v88_v48 = vpop.permute.xlu1 %87  ;;  %v260_v49 = vpop.permute.xlu0 %259 }
  0xfd   :  { %v95_v50 = vpop.permute.xlu1 %94  ;;  %v266_v51 = vpop.permute.xlu0 %265 }
 0x101   :  { %v262_v53 = vpop.permute.xlu1 %261  ;;  %v534_v54 = vpop.permute.xlu0 %533 }
 0x102   :  { %v263_v61 = vsel %vm89_vm3, %v260_v49, %v262_v53  ;;  %v1630_v62 = vsel %vm89_vm3, %v262_v53, %v260_v49  ;;  %v187_v53 = vpack.c.bf16 %v1569_v34, %v1569_v34 }
 0x105   :  { %v268_v59 = vpop.permute.xlu1 %267  ;;  %v540_v60 = vpop.permute.xlu0 %539 }
 0x106   :  { %v1634_v63 = vsel %vm96_vm4, %v266_v51, %v268_v59  ;;  %v270_v4 = vsel %vm96_vm4, %v268_v59, %v266_v51  ;;  %v1732_v59 = vsel %vm1620_vm9, %v451_v33, %v456_v38 }
 0x107   :  { %v1642_v6 = vsel %vm1616_vm8, %v1634_v63, %v1630_v62  ;;  %v1646_v7 = vsel %vm1548_vm6, %v263_v61, %v270_v4  ;;  %v1650_v8 = vsel %vm1538_vm5, %v270_v4, %v263_v61  ;;  %v1321_v4 = vpack.c.bf16 %v1467_v2, %v1596_v44 }
 0x108   :  { %v1323_v12 = vpack.c.bf16 %v1650_v8, %v1573_v35  ;;  %v1322_v15 = vpack.c.bf16 %v1642_v6, %v1654_v9 }
 0x109   :  { %v536_v13 = vpop.permute.xlu1 %535  ;;  %v86_v14 = vpop.permute.xlu0 %85 }
 0x10a   :  { %966 = vmatprep.subr.bf16.mxu0 %v1323_v12  ;;  %v537_v20 = vsel %vm89_vm3, %v534_v54, %v536_v13  ;;  %v90_v39 = vsel %vm89_vm3, %v86_v14, %v88_v48  ;;  %v1692_v47 = vsel %vm89_vm3, %v536_v13, %v534_v54  ;;  %v91_v49 = vsel %vm89_vm3, %v88_v48, %v86_v14 }
 0x10b   :  { %967 = vmatpush1.bf16.msra.mxu0 %v1322_v15  ;;  %v1724_v54 = vsel %vm1616_vm8, %v456_v38, %v451_v33  ;;  %v1762_v33 = vunpack.c.l.bf16 %v210_v37  ;;  %v1768_v38 = vsel %vm1620_vm9, %v1630_v62, %v1634_v63 }
 0x10c   :  { %968 = vmatprep.subr.bf16.mxu0 %v1319_v16  ;;  %2014 = vst [vmem:[#allocation10_spill] sm:$0xff] %v1768_v38  ;;  %v1320_v63 = vpack.c.bf16 %v1469_v3, %v1724_v54 }
 0x10d   :  { %v542_v21 = vpop.permute.xlu1 %541  ;;  %v93_v22 = vpop.permute.xlu0 %92 }
 0x10e   :  { %v1672_v24 = vsel %vm96_vm4, %v540_v60, %v542_v21  ;;  %v544_v26 = vsel %vm96_vm4, %v542_v21, %v540_v60  ;;  %v97_v29 = vsel %vm96_vm4, %v93_v22, %v95_v50  ;;  %v98_v30 = vsel %vm96_vm4, %v95_v50, %v93_v22 }
 0x10f   :  { %v1688_v43 = vsel %vm1548_vm6, %v537_v20, %v544_v26  ;;  %969 = vmatpush1.bf16.msra.mxu0 %v1318_v23  ;;  %v1698_v36 = vsel %vm1538_vm5, %v98_v30, %v90_v39  ;;  %v1706_v40 = vsel %vm1616_vm8, %v1672_v24, %v1692_v47  ;;  %v1710_v41 = vsel %vm1620_vm9, %v91_v49, %v97_v29 }
 0x110   :  { %v1714_v48 = vsel %vm1548_vm6, %v90_v39, %v98_v30  ;;  %v1718_v52 = vsel %vm1538_vm5, %v544_v26, %v537_v20  ;;  %v1742_v12 = vsel %vm1616_vm8, %v97_v29, %v91_v49  ;;  %v1314_v13 = vpack.c.bf16 %v1710_v41, %v1555_v31 }
 0x111   :  { %v364_v50 = vpop.permute.xlu1 %363  ;;  %v362_v51 = vpop.permute.xlu0 %361  ;;  %v1315_v60 = vpack.c.bf16 %v1714_v48, %v1503_v11  ;;  %v1325_v61 = vpack.c.bf16 %v1718_v52, %v1600_v45  ;;  %v1324_v14 = vpack.c.bf16 %v1706_v40, %v1732_v59  ;;  %v1311_v15 = vpack.c.bf16 %v1698_v36, %v1646_v7 }
 0x112   :  { %v150_v16 = vpack.c.bf16 %v1714_v48, %v1714_v48  ;;  %v365_v20 = vsel %vm89_vm3, %v362_v51, %v364_v50  ;;  %v1299_v23 = vpack.c.bf16 %v1569_v34, %v1714_v48  ;;  %v366_v26 = vsel %vm89_vm3, %v364_v50, %v362_v51 }
 0x113   :  { %970 = vmatprep.subr.bf16.mxu0 %v1315_v60  ;;  %1007 = vmatprep.subr.bf16.mxu1 %v1325_v61  ;;  %v1310_v62 = vpack.c.bf16 %v1742_v12, %v1768_v38  ;;  %v1307_v50 = vpack.c.bf16 %v1522_v19, %v1650_v8  ;;  %v1309_v60 = vpack.c.bf16 %v1559_v32, %v1718_v52 }
 0x114   :  { %971 = vmatpush1.bf16.msra.mxu0 %v1314_v13  ;;  %1008 = vmatpush1.bf16.msra.mxu1 %v1324_v14  ;;  %v152_v61 = vunpack.c.l.bf16 %v150_v16  ;;  %v461_v13 = vpack.c.bf16 %v1596_v44, %v1596_v44  ;;  %v1306_v16 = vpack.c.bf16 %v1499_v10, %v1642_v6  ;;  %v547_v46 = vpack.c.bf16 %v1706_v40, %v1706_v40 }
 0x115   :  { %v370_v21 = vpop.permute.xlu1 %369  ;;  %v368_v22 = vpop.permute.xlu0 %367  ;;  %972 = vmatprep.subr.bf16.mxu0 %v1311_v15  ;;  %1009 = vmatprep.subr.bf16.mxu1 %v1321_v4  ;;  %v189_v4 = vunpack.c.l.bf16 %v187_v53  ;;  %v321_v53 = vpack.c.bf16 %v1768_v38, %v1768_v38 }
 0x116   :  { %v371_v29 = vsel %vm96_vm4, %v368_v22, %v370_v21  ;;  %v372_v30 = vsel %vm96_vm4, %v370_v21, %v368_v22  ;;  %v322_v21 = vpack.c.bf16 %v1646_v7, %v1646_v7  ;;  %v1814_v22 = vunpack.c.l.bf16 %v483_v25 }
 0x117   :  { %v1772_v39 = vsel %vm1538_vm5, %v372_v30, %v365_v20  ;;  %v1776_v49 = vsel %vm1620_vm9, %v366_v26, %v371_v29  ;;  %v1782_v37 = vsel %vm1548_vm6, %v365_v20, %v372_v30  ;;  %v1806_v20 = vunpack.c.l.bf16 %v484_v58 }
 0x118   :  { %v1317_v51 = vpack.c.bf16 %v1782_v37, %v1546_v27  ;;  %v1313_v28 = vpack.c.bf16 %v1772_v39, %v1688_v43  ;;  %973 = vmatpush1.bf16.msra.mxu0 %v1310_v62  ;;  %1010 = vmatpush1.bf16.msra.mxu1 %v1320_v63  ;;  %v1316_v55 = vpack.c.bf16 %v1776_v49, %v1586_v42 }
 0x119   :  { %974 = vmatprep.subr.bf16.mxu0 %v1307_v50  ;;  %v1818_v30 = vsel %vm1616_vm8, %v371_v29, %v366_v26  ;;  %v424_v62 = vpack.c.bf16 %v1782_v37, %v1782_v37  ;;  %v1303_v58 = vpack.c.bf16 %v1573_v35, %v1462_v1  ;;  %v296_v63 = vpack.c.bf16 %v1499_v10, %v1499_v10 }
 0x11a   :  { %1011 = vmatprep.subr.bf16.mxu1 %v1317_v51  ;;  %v297_v50 = vpack.c.bf16 %v1522_v19, %v1522_v19  ;;  %v154_v25 = vsub.f32 %v1714_v48, %v152_v61  ;;  %v191_v56 = vsub.f32 %v1569_v34, %v189_v4  ;;  %v274_v26 = vpack.c.bf16 %v1650_v8, %v1650_v8 }
 0x11b   :  { %v1836_v29 = vsel %vm1620_vm9, %v1692_v47, %v1672_v24  ;;  %v1302_v51 = vpack.c.bf16 %v1654_v9, %v1457_v0  ;;  %v323_v4 = vunpack.c.l.bf16 %v321_v53  ;;  %v426_v47 = vunpack.c.l.bf16 %v424_v62 }
 0x11c   :  { %975 = vmatpush1.bf16.msra.mxu0 %v1306_v16  ;;  %1012 = vmatpush1.bf16.msra.mxu1 %v1316_v55  ;;  %v463_v55 = vunpack.c.l.bf16 %v461_v13  ;;  %v324_v16 = vunpack.c.l.bf16 %v322_v21  ;;  %v1312_v61 = vpack.c.bf16 %v1818_v30, %v1836_v29  ;;  %v1842_v15 = vpack.c.bf16 %v191_v56, %v154_v25 }
 0x11d   :  { %976 = vmatprep.subr.bf16.mxu0 %v1303_v58  ;;  %1013 = vmatprep.subr.bf16.mxu1 %v1313_v28  ;;  %v235_v28 = vpack.c.bf16 %v1573_v35, %v1573_v35  ;;  %v1305_v13 = vpack.c.bf16 %v1600_v45, %v1467_v2  ;;  %v299_v21 = vunpack.c.l.bf16 %v297_v50  ;;  %v1854_v53 = vunpack.c.l.bf16 %v296_v63 }
 0x11e   :  { %v273_v58 = vpack.c.bf16 %v1642_v6, %v1642_v6  ;;  %v276_v62 = vunpack.c.l.bf16 %v274_v26  ;;  %v428_v25 = vsub.f32 %v1782_v37, %v426_v47  ;;  %v465_v56 = vsub.f32 %v1596_v44, %v463_v55 }
 0x11f   :  { %v1308_v63 = vpack.c.bf16 %v1518_v18, %v1706_v40  ;;  %v326_v50 = vsub.f32 %v1646_v7, %v324_v16  ;;  %v596_v34 = vpack.c.bf16 %v1688_v43, %v1688_v43  ;;  %v1295_v48 = vpack.c.bf16 %v1503_v11, %v1698_v36 }
 0x120   :  { %977 = vmatpush1.bf16.msra.mxu0 %v1302_v51  ;;  %1014 = vmatpush1.bf16.msra.mxu1 %v1312_v61  ;;  %v1298_v51 = vpack.c.bf16 %v1664_v17, %v1710_v41  ;;  %v325_v61 = vsub.f32 %v1768_v38, %v323_v4  ;;  %v234_v26 = vpack.c.bf16 %v1654_v9, %v1654_v9  ;;  %v237_v55 = vunpack.c.l.bf16 %v235_v28 }
 0x121   :  { %978 = vmatprep.subr.bf16.mxu0 %v1299_v23  ;;  %1015 = vmatprep.subr.bf16.mxu1 %v1309_v60  ;;  %v595_v23 = vpack.c.bf16 %v1836_v29, %v1836_v29  ;;  %v1875_v60 = vpack.c.bf16 %v465_v56, %v428_v25  ;;  %v125_v16 = vpack.c.bf16 %v1503_v11, %v1503_v11  ;;  %v275_v24 = vunpack.c.l.bf16 %v273_v58 }
 0x122   :  { %v301_v47 = vsub.f32 %v1522_v19, %v299_v21  ;;  %v300_v25 = vsub.f32 %v1499_v10, %v1854_v53  ;;  %v571_v56 = vpack.c.bf16 %v1559_v32, %v1559_v32  ;;  %v548_v28 = vpack.c.bf16 %v1718_v52, %v1718_v52 }
 0x123   :  { %v1347_v21 = vpack.c.bf16 %v326_v50, %v326_v50  ;;  %v1346_v58 = vpack.c.bf16 %v325_v61, %v325_v61  ;;  %v597_v57 = vunpack.c.l.bf16 %v595_v23  ;;  %v509_v53 = vpack.c.bf16 %v1600_v45, %v1600_v45 }
 0x124   :  { %979 = vmatpush1.bf16.msra.mxu0 %v1298_v51  ;;  %1016 = vmatpush1.bf16.msra.mxu1 %v1308_v63  ;;  %v1294_v51 = vpack.c.bf16 %v1555_v31, %v1742_v12  ;;  %v1304_v63 = vpack.c.bf16 %v1732_v59, %v1469_v3  ;;  %v239_v4 = vsub.f32 %v1573_v35, %v237_v55  ;;  %v236_v14 = vunpack.c.l.bf16 %v234_v26 }
 0x125   :  { %980 = vmatprep.subr.bf16.mxu0 %v1295_v48  ;;  %1017 = vmatprep.subr.bf16.mxu1 %v1305_v13  ;;  %v278_v13 = vsub.f32 %v1650_v8, %v276_v62  ;;  %v598_v48 = vunpack.c.l.bf16 %v596_v34  ;;  %v102_v38 = vpack.c.bf16 %v1698_v36, %v1698_v36  ;;  %v2015_v8 = vpack.c.bf16 %v1596_v44, %v1782_v37 }
 0x126   :  { %v277_v62 = vsub.f32 %v1642_v6, %v275_v24  ;;  %v149_v50 = vpack.c.bf16 %v1710_v41, %v1710_v41  ;;  %v1300_v35 = vpack.c.bf16 %v1724_v54, %v1776_v49  ;;  %v550_v34 = vunpack.c.l.bf16 %v548_v28 }
 0x127   :  { %v1343_v61 = vpack.c.bf16 %v301_v47, %v278_v13  ;;  %v955_v23 = vsel %vm953_vm10, %v1346_v58, 0  ;;  %v1297_v26 = vpack.c.bf16 %v1546_v27, %v1772_v39  ;;  %v600_v55 = vsub.f32 %v1688_v43, %v598_v48 }
 0x128   :  { %981 = vmatpush1.bf16.msra.mxu0 %v1294_v51  ;;  %1018 = vmatpush1.bf16.msra.mxu1 %v1304_v63  ;;  %v599_v44 = vsub.f32 %v1836_v29, %v597_v57  ;;  %v186_v6 = vpack.c.bf16 %v1664_v17, %v1664_v17  ;;  %v238_v37 = vsub.f32 %v1654_v9, %v236_v14  ;;  %v573_v24 = vunpack.c.l.bf16 %v571_v56 }
 0x129   :  { %1250 = vmatprep.subr.msk.bf16.mxu0 %vm953_vm10, %v1347_v21  ;;  %1019 = vmatprep.subr.bf16.mxu1 %v2015_v8  ;;  %v570_v47 = vpack.c.bf16 %v1518_v18, %v1518_v18  ;;  %v508_v28 = vpack.c.bf16 %v1732_v59, %v1732_v59  ;;  %v101_v51 = vpack.c.bf16 %v1742_v12, %v1742_v12  ;;  %v511_v13 = vunpack.c.l.bf16 %v509_v53 }
 0x12a   :  { %v2016_v57 = vsub.f32 %v1462_v1, %v1762_v33  ;;  %v1342_v48 = vpack.c.bf16 %v300_v25, %v277_v62  ;;  %v1296_v9 = vpack.c.bf16 %v1586_v42, %v1818_v30  ;;  %v151_v14 = vunpack.c.l.bf16 %v149_v50 }
 0x12b   :  { %v549_v56 = vunpack.c.l.bf16 %v547_v46  ;;  %v1349_v21 = vpack.c.bf16 %v600_v55, %v600_v55  ;;  %v1348_v58 = vpack.c.bf16 %v599_v44, %v599_v44  ;;  %v552_v8 = vsub.f32 %v1718_v52, %v550_v34 }
 0x12c   :  { %987 = vmatpush2.bf16.msra.mxu0 %v955_v23  ;;  %1020 = vmatpush1.bf16.msra.mxu1 %v1300_v35  ;;  %v1339_v63 = vpack.c.bf16 %v239_v4, %v2016_v57  ;;  %v104_v35 = vunpack.c.l.bf16 %v102_v38  ;;  %v572_v23 = vunpack.c.l.bf16 %v570_v47  ;;  %v399_v1 = vpack.c.bf16 %v1546_v27, %v1546_v27 }
 0x12d   :  { %988 = vmatprep.subr.bf16.mxu0 %v1343_v61  ;;  %1021 = vmatprep.subr.bf16.mxu1 %v1297_v26  ;;  %v188_v61 = vunpack.c.l.bf16 %v186_v6  ;;  %v127_v26 = vunpack.c.l.bf16 %v125_v16  ;;  %v2017_v33 = vsub.f32 %v1457_v0, %v1778_v5  ;;  %v575_v4 = vsub.f32 %v1559_v32, %v573_v24 }
 0x12e   :  { %v513_v52 = vsub.f32 %v1600_v45, %v511_v13  ;;  %v510_v38 = vunpack.c.l.bf16 %v508_v28  ;;  %v423_v25 = vpack.c.bf16 %v1776_v49, %v1776_v49  ;;  %v153_v16 = vsub.f32 %v1710_v41, %v151_v14 }
 0x12f   :  { %v1338_v46 = vpack.c.bf16 %v238_v37, %v2017_v33  ;;  %v551_v53 = vsub.f32 %v1706_v40, %v549_v56  ;;  %v103_v62 = vunpack.c.l.bf16 %v101_v51  ;;  %v376_v50 = vpack.c.bf16 %v1772_v39, %v1772_v39 }
 0x130   :  { %989 = vmatpush2.bf16.msra.mxu0 %v1342_v48  ;;  %1022 = vmatpush1.bf16.msra.mxu1 %v1296_v9  ;;  %v961_v34 = vsel %vm953_vm10, %v1348_v58, 0  ;;  %v1345_v0 = vpack.c.bf16 %v575_v4, %v552_v8  ;;  %v106_v5 = vsub.f32 %v1698_v36, %v104_v35  ;;  %v460_v45 = vpack.c.bf16 %v1724_v54, %v1724_v54 }
 0x131   :  { %990 = vmatprep.subr.bf16.mxu0 %v1339_v63  ;;  %1252 = vmatprep.subr.msk.bf16.mxu1 %vm953_vm10, %v1349_v21  ;;  %v190_v55 = vsub.f32 %v1664_v17, %v188_v61  ;;  %v574_v41 = vsub.f32 %v1518_v18, %v572_v23  ;;  %v2018_v40 = vpack.c.bf16 %v1555_v31, %v1555_v31  ;;  %v425_v28 = vunpack.c.l.bf16 %v423_v25 }
 0x132   :  { %v375_v6 = vpack.c.bf16 %v1818_v30, %v1818_v30  ;;  %v129_v36 = vsub.f32 %v1503_v11, %v127_v26  ;;  %v512_v37 = vsub.f32 %v1732_v59, %v510_v38  ;;  %v105_v17 = vsub.f32 %v1742_v12, %v103_v62  ;;  %v1049_v62 = vld [vmem:[%s2001_s3] sm:$0xff] }
 0x133   :  { %v126_v44 = vunpack.c.l.bf16 %v2018_v40  ;;  %v1334_v24 = vpack.c.bf16 %v190_v55, %v153_v16  ;;  %v1344_v47 = vpack.c.bf16 %v574_v41, %v551_v53  ;;  %v2019_v57 = vsub.f32 %v1467_v2, %v1806_v20  ;;  %v1048_v53 = vld [vmem:[%s2000_s2] sm:$0xff]  ;;  %s1425_s2 = smov [#allocation6]  }
 0x134   :  { %991 = vmatpush2.bf16.msra.mxu0 %v1338_v46  ;;  %1028 = vmatpush2.bf16.msra.mxu1 %v961_v34  ;;  %v1331_v51 = vpack.c.bf16 %v129_v36, %v106_v5  ;;  %v378_v13 = vunpack.c.l.bf16 %v376_v50  ;;  %v462_v48 = vunpack.c.l.bf16 %v460_v45  ;;  %v398_v11 = vpack.c.bf16 %v1586_v42, %v1586_v42  ;;  %s1144_s3 = sshll.u32 %s1425_s2, 4  ;;  %s1145_s3 = int_to_ptr.vmem [resolvable:$true] %s1144_s3 }
 0x135   :  { %992 = vmatprep.subr.bf16.mxu0 %v1842_v15  ;;  %1029 = vmatprep.subr.bf16.mxu1 %v1345_v0  ;;  %v1341_v63 = vpack.c.bf16 %v513_v52, %v2019_v57  ;;  %v128_v15 = vsub.f32 %v1555_v31, %v126_v44  ;;  %v401_v59 = vunpack.c.l.bf16 %v399_v1  ;;  %v2020_v12 = vsub.f32 %v1469_v3, %v1814_v22  ;;  %v2021_v3 = vld [vmem:[#allocation10_spill] sm:$0xff]  ;;  %s1394_s29 = scalar_lea.vmem %s1145_s3, 512  ;;  %p1399_p6 = scmp.lt.s32.totalorder %s1145_s3, %s1145_s3 }
 0x136   :  { %v427_v2 = vsub.f32 %v1776_v49, %v425_v28  ;;  %v377_v20 = vunpack.c.l.bf16 %v375_v6  ;;  %v1327_v56 = vpack.c.bf16 %v1646_v7, %v1522_v19  ;;  %v380_v31 = vsub.f32 %v1772_v39, %v378_v13  ;;  %v2022_v19 = vld [vmem:[#allocation9_spill] sm:$0xff]  ;;  %p1395_p5 = scmp.ne.s32.totalorder %s1145_s3, %s1394_s29  ;;  %p1400_p7 = scmp.lt.s32.totalorder %s1394_s29, %s1394_s29 }
 0x137   :  { %v1330_v9 = vpack.c.bf16 %v128_v15, %v105_v17  ;;  %v1340_v14 = vpack.c.bf16 %v512_v37, %v2020_v12  ;;  %v464_v21 = vsub.f32 %v1724_v54, %v462_v48  ;;  %v400_v58 = vunpack.c.l.bf16 %v398_v11 }
 0x138   :  { %993 = vmatpush2.bf16.msra.mxu0 %v1334_v24  ;;  %1030 = vmatpush2.bf16.msra.mxu1 %v1344_v47  ;;  %v403_v8 = vsub.f32 %v1546_v27, %v401_v59  ;;  %v1326_v22 = vpack.c.bf16 %v2021_v3, %v1499_v10  ;;  %v379_v35 = vsub.f32 %v1818_v30, %v377_v20  ;;  %v1424_v30 = vmov 0   ;;  %p1401_p8 = por %p1400_p7, %p1399_p6 }
 0x139   :  { %994 = vmatprep.subr.bf16.mxu0 %v1331_v51  ;;  %1031 = vmatprep.subr.bf16.mxu1 %v1341_v63  ;;  %v1336_v49 = vpack.c.bf16 %v464_v21, %v427_v2  ;;  %v1192_v7 = vcombine.low %v2022_v19, %v2022_v19  ;;  %v402_v54 = vsub.f32 %v1586_v42, %v400_v58 }
 0x13a   :  { %v1333_v61 = vpack.c.bf16 %v403_v8, %v380_v31  ;;  %v1329_v27 = vpack.c.bf16 %v1688_v43, %v1559_v32  ;;  %v1328_v10 = vpack.c.bf16 %v1836_v29, %v1518_v18  ;;  %1358 = vset.pattern.permute.xlu1 %v1424_v30  ;;  %1359 = vset.pattern.permute.xlu0 %v1424_v30  ;;  %p1402_p9 = pnand %p1401_p8, %p1395_p5 }
 0x13b   :  { %v1332_v39 = vpack.c.bf16 %v402_v54, %v379_v35 }
 0x13c   :  { %995 = vmatpush2.bf16.msra.mxu0 %v1330_v9  ;;  %1032 = vmatpush2.bf16.msra.mxu1 %v1340_v14 }
 0x13d   :  { %996 = vmatprep.subr.bf16.mxu0 %v1327_v56  ;;  %1033 = vmatprep.subr.bf16.mxu1 %v1875_v60 }
 0x140   :  { %997 = vmatpush2.bf16.msra.mxu0 %v1326_v22  ;;  %1034 = vmatpush2.bf16.msra.mxu1 %v1336_v49 }
 0x141   :  { %1035 = vmatprep.subr.bf16.mxu1 %v1333_v61 }
 0x143   :  { %999 = vmatmul.mubr.bf16.vlgmr.msra.gmra.mxu0 %v1192_v7 }
 0x144   :  { %1036 = vmatpush2.bf16.msra.mxu1 %v1332_v39 }
 0x145   :  { %1037 = vmatprep.subr.bf16.mxu1 %v1329_v27 }
 0x148   :  { %1038 = vmatpush2.bf16.msra.mxu1 %v1328_v10 }
 0x14b   :  { %1040 = vmatmul.mubr.bf16.vlgmr.msra.gmra.mxu1 %v1192_v7 }
 0x203   :  { %v1000_v60 = vpop.f32.mrf.mxu0 }
 0x204   :  { %v1053_v42 = vmul.f32 %v1000_v60, %v1000_v60 }
 0x205   :  { %v1002_v23 = vpop.f32.mrf.mxu0 }
 0x206   :  { %v1050_v26 = vadd.f32 %v1002_v23, %v1000_v60  ;;  %v1054_v1 = vmul.f32 %v1002_v23, %v1002_v23 }
 0x207   :  { %v1004_v33 = vpop.f32.mrf.mxu0 }
 0x208   :  { %1051 = vadd.xlane.f32.xlu0 %v1050_v26  ;;  %v1055_v4 = vadd.f32 %v1054_v1, %v1053_v42 }
 0x209   :  { %v1005_v46 = vpop.f32.mrf.mxu0 }
 0x20b   :  { %v1041_v32 = vpop.f32.mrf.mxu1 }
 0x20c   :  { %1056 = vadd.xlane.f32.xlu0 %v1055_v4  ;;  %v1102_v38 = vmul.f32 %v1041_v32, %v1041_v32 }
 0x20d   :  { %v1043_v43 = vpop.f32.mrf.mxu1 }
 0x20e   :  { %v1099_v52 = vadd.f32 %v1043_v43, %v1041_v32  ;;  %v1103_v18 = vmul.f32 %v1043_v43, %v1043_v43 }
 0x20f   :  { %v1045_v29 = vpop.f32.mrf.mxu1 }
 0x210   :  { %1100 = vadd.xlane.f32.xlu1 %v1099_v52  ;;  %v1104_v25 = vadd.f32 %v1103_v18, %v1102_v38 }
 0x211   :  { %v1046_v16 = vpop.f32.mrf.mxu1 }
 0x212   :  { %1105 = vadd.xlane.f32.xlu0 %v1104_v25 }
 0x221   :  { %1071 = vperm.xlu1 %1358, %v1048_v53  }
 0x228   :  { %1078 = vperm.xlu0 %1359, %v1049_v62  }
 0x291   :  { %v1052_v50 = vpop.xlane.xlu0 %1051 }
 0x292   :  { %v1058_v34 = vmul.f32 0.00390625, %v1052_v50 }
 0x294   :  { %v1060_v5 = vmul.f32 %v1058_v34, %v1058_v34  ;;  %v1063_v51 = vsub.f32 %v1000_v60, %v1058_v34  ;;  %v1064_v57 = vsub.f32 %v1002_v23, %v1058_v34 }
 0x295   :  { %v1057_v0 = vpop.xlane.xlu0 %1056 }
 0x296   :  { %v1059_v45 = vmul.f32 0.00390625, %v1057_v0 }
 0x298   :  { %v1061_v55 = vsub.f32 %v1059_v45, %v1060_v5 }
 0x299   :  { %v1101_v41 = vpop.xlane.xlu1 %1100 }
 0x29a   :  { %v1062_v40 = vmax.f32 %v1061_v55, 0.0  ;;  %v1107_v44 = vmul.f32 0.00390625, %v1101_v41 }
 0x29b   :  { %v1106_v6 = vpop.xlane.xlu0 %1105 }
 0x29c   :  { %v1065_v36 = vadd.f32 1e-05, %v1062_v40  ;;  %v1109_v37 = vmul.f32 %v1107_v44, %v1107_v44  ;;  %v1108_v24 = vmul.f32 0.00390625, %v1106_v6  ;;  %v1112_v2 = vsub.f32 %v1041_v32, %v1107_v44 }
 0x29d   :  { %v1072_v13 = vpop.permute.xlu1 %1071  ;;  %v1113_v20 = vsub.f32 %v1043_v43, %v1107_v44 }
 0x29e   :  { %1362 = vrsqrt.f32 %v1065_v36  ;;  %v1110_v47 = vsub.f32 %v1108_v24, %v1109_v37 }
 0x2a0   :  { %v1111_v17 = vmax.f32 %v1110_v47, 0.0 }
 0x2a2   :  { %v1114_v28 = vadd.f32 1e-05, %v1111_v17 }
 0x2a3   :  { %v1079_v11 = vpop.permute.xlu0 %1078 }
 0x2a4   :  { %1364 = vrsqrt.f32 %v1114_v28 }
 0x2ab   :  { %v1363_v63 = vpop.eup %1362 }
 0x2ac   :  { %v1067_v15 = vmul.f32 %v1363_v63, %v1063_v51  ;;  %v1068_v48 = vmul.f32 %v1363_v63, %v1064_v57 }
 0x2ae   :  { %v1074_v59 = vmul.f32 %v1072_v13, %v1067_v15  ;;  %v1075_v9 = vmul.f32 %v1072_v13, %v1068_v48 }
 0x2b0   :  { %v1081_v12 = vadd.f32 %v1079_v11, %v1074_v59  ;;  %v1082_v14 = vadd.f32 %v1079_v11, %v1075_v9 }
 0x2b1   :  { %v1365_v56 = vpop.eup %1364 }
 0x2b2   :  { %v1085_v31 = vmul.f32 1.442695, %v1081_v12  ;;  %v1087_v21 = vmul.f32 1.442695, %v1082_v14  ;;  %v1116_v58 = vmul.f32 %v1365_v56, %v1112_v2  ;;  %v1117_v8 = vmul.f32 %v1365_v56, %v1113_v20 }
 0x2b3   :  { %vm1083_vm11 = vcmp.gt.f32.partialorder %v1081_v12, 0.0  ;;  %vm1084_vm12 = vcmp.gt.f32.partialorder %v1082_v14, 0.0 }
 0x2b4   :  { %1366 = vpow2.f32 %v1085_v31  ;;  %v1118_v3 = vmul.f32 %v1116_v58, %v1072_v13  ;;  %v1119_v22 = vmul.f32 %v1117_v8, %v1072_v13 }
 0x2b5   :  { %1368 = vpow2.f32 %v1087_v21 }
 0x2b6   :  { %v1120_v49 = vadd.f32 %v1118_v3, %v1079_v11  ;;  %v1121_v35 = vadd.f32 %v1119_v22, %v1079_v11 }
 0x2b8   :  { %v1124_v61 = vmul.f32 1.442695, %v1120_v49  ;;  %v1126_v19 = vmul.f32 1.442695, %v1121_v35  ;;  %vm1122_vm13 = vcmp.gt.f32.partialorder %v1120_v49, 0.0  ;;  %vm1123_vm14 = vcmp.gt.f32.partialorder %v1121_v35, 0.0 }
 0x2ba   :  { %1370 = vpow2.f32 %v1124_v61 }
 0x2bb   :  { %1372 = vpow2.f32 %v1126_v19 }
 0x2c1   :  { %v1367_v7 = vpop.eup %1366 }
 0x2c2   :  { %v1369_v54 = vpop.eup %1368  ;;  %v1254_v39 = vadd.f32 -1.0, %v1367_v7 }
 0x2c3   :  { %v1255_v27 = vadd.f32 -1.0, %v1369_v54 }
 0x2c4   :  { %v1091_v10 = vmul.f32 1.6732632, %v1254_v39 }
 0x2c5   :  { %v1092_v30 = vmul.f32 1.6732632, %v1255_v27 }
 0x2c6   :  { %v1093_v60 = vsel %vm1083_vm11, %v1081_v12, %v1091_v10 }
 0x2c7   :  { %v1094_v23 = vsel %vm1084_vm12, %v1082_v14, %v1092_v30  ;;  %v1095_v26 = vmul.f32 1.050701, %v1093_v60  ;;  %v1371_v42 = vpop.eup %1370 }
 0x2c8   :  { %v1096_v1 = vmul.f32 1.050701, %v1094_v23  ;;  %v1373_v33 = vpop.eup %1372  ;;  %v1256_v46 = vadd.f32 -1.0, %v1371_v42 }
 0x2c9   :  { %1097 = vst [vmem:[#allocation6] sm:$0xff] %v1095_v26  ;;  %v1257_v4 = vadd.f32 -1.0, %v1373_v33 }
 0x2ca   :  { %1098 = vst [vmem:[#allocation6 + $0x8] sm:$0xff] %v1096_v1  ;;  %v1130_v32 = vmul.f32 1.6732632, %v1256_v46 }
 0x2cb   :  { %v1131_v43 = vmul.f32 1.6732632, %v1257_v4 }
 0x2cc   :  { %v1132_v52 = vsel %vm1122_vm13, %v1120_v49, %v1130_v32 }
 0x2cd   :  { %v1133_v38 = vsel %vm1123_vm14, %v1121_v35, %v1131_v43  ;;  %v1134_v18 = vmul.f32 1.050701, %v1132_v52 }
 0x2ce   :  { %v1135_v29 = vmul.f32 1.050701, %v1133_v38 }
 0x2cf   :  { %1137 = vst [vmem:[#allocation6 + $0x10] sm:$0xff] %v1134_v18 }
 0x2d0   :  { %1138 = vst [vmem:[#allocation6 + $0x18] sm:$0xff] %v1135_v29 }
 0x2d1   :  { %1405 = shalt.err (!%p1402_p9)
}
 0x2d2   :  { %1150 = dma.vmem_to_hbm [thread:$0]  %s1145_s3, 512, %s2002_s4, [#allocation5], %s1419_s18, %s1419_s18, %s1420_s19  }
 0x2d3   :  { %1416 = dma.done.wait [#allocation5], 512  }
 0x2d4   :  { %1417 = vsyncadd [#allocation5], 4294966784 }
 0x2d5   :  { %1154 = vsyncpa [#allocation4], 1 }
 0x2d6   :  { %1155 = vsyncpa [#allocation5], 1 }

</bundles_post_ra>
